<compile_context>
chip_gen: v7x
topology: tpu7x:2x2x1
jax: 0.10.0
libtpu: 0.0.40
codegen_flags: <defaults>
</compile_context>

<pallas_src>
import functools
import math

import numpy as np
import jax
import jax.numpy as jnp
from jax.experimental import pallas as pl
from jax.experimental.pallas import tpu as pltpu

_BN_EPS = 1e-5
_LRELU_SLOPE = 0.2
_VMEM_CAP = 48 * 1024 * 1024     # <= 75% of v7x's 64 MiB per-TC VMEM
_VMEM_FLOOR = 8 * 1024 * 1024


def _compiler_params(est_bytes):
    limit = int(min(_VMEM_CAP, max(_VMEM_FLOOR, 2 * int(est_bytes))))
    # TODO(synk): on v7x (2 TensorCores/chip) switch the batch axis to
    # pltpu.CORE_PARALLEL (or pl.core_map) so B >= 2 shards across both cores.
    return pltpu.CompilerParams(
        dimension_semantics=("parallel",),
        vmem_limit_bytes=limit)


def _lane_roll(a, shift, size):
    """jnp.roll(a, shift, axis=1) with the shift guaranteed on the XLU slot."""
    shift = shift % size
    if shift == 0:
        return a
    if size % 128 == 0:
        return pltpu.roll(a, shift, axis=1)
    return jnp.roll(a, shift, axis=1)


# ----------------------------------------------------------------------------
# Kernel 1: GlobalFilter (full 2D rDFT, two lane-dense matmuls) fused with
#           conv1 (3x3, dil=2) as a single im2col matmul + per-batch BN
#           partial statistics.  One batch per grid step.
# ----------------------------------------------------------------------------
def _filter_conv1_kernel(x_ref, ffwd_ref, finv_ref, wpack_ref, w1_ref,
                         mask_ref, z_ref, s_ref, *, offsets, hv):
    _, C, HW = x_ref.shape
    dot = functools.partial(jnp.dot, preferred_element_type=jnp.float32)

    # ---- GlobalFilter: rfft2 -> complex weight -> irfft2 (norm='ortho') ----
    x = x_ref[0].astype(jnp.bfloat16)                        # (C, HW)
    z = dot(x, ffwd_ref[...])                                # (C, 2HV) f32 [Re|Im]
    z_re, z_im = z[:, :hv], z[:, hv:]
    w_re, w_im = wpack_ref[:, :hv], wpack_ref[:, hv:]        # (C, HV) f32
    y_re = z_re * w_re - z_im * w_im
    y_im = z_re * w_im + z_im * w_re
    y = jnp.concatenate([y_re, y_im], axis=1).astype(jnp.bfloat16)
    filt = dot(y, finv_ref[...])                             # (C, HW) f32

    # ---- conv1: im2col with XLU lane rolls; masks stay f32; one bf16 cast.
    taps = []
    for k, off in enumerate(offsets):
        taps.append(_lane_roll(filt, -off, HW) * mask_ref[k])
    tap_mat = jnp.concatenate(taps, axis=0).astype(jnp.bfloat16)   # (9C, HW)
    # NOTE: at production C, feed several batches' HW as one wide RHS (or
    # transpose) to fill MXU rows; at toy sizes the (C,9C)@(9C,HW) launch keeps
    # the output lane-dense which matters more for the store path.
    z1 = dot(w1_ref[...], tap_mat)                           # (C, HW) f32

    z_ref[0] = z1.astype(z_ref.dtype)                        # bf16 to HBM
    s_ref[0, :, 0:1] = jnp.sum(z1, axis=1, keepdims=True)
    s_ref[0, :, 1:2] = jnp.sum(z1 * z1, axis=1, keepdims=True)


# ----------------------------------------------------------------------------
# Kernel 2: fused BN1 + LeakyReLU pre-activation + conv2 (3x3, dil=1) im2col
#           matmul + per-batch BN partial statistics.
# ----------------------------------------------------------------------------
def _conv2_kernel(a_ref, scale_ref, shift_ref, w2_ref, mask_ref,
                  z_ref, s_ref, *, offsets):
    _, C, HW = a_ref.shape
    dot = functools.partial(jnp.dot, preferred_element_type=jnp.float32)

    a = a_ref[0].astype(jnp.float32) * scale_ref[...] + shift_ref[...]   # BN1
    a = jnp.where(a >= 0.0, a, _LRELU_SLOPE * a)                         # LReLU

    taps = []
    for k, off in enumerate(offsets):
        taps.append(_lane_roll(a, -off, HW) * mask_ref[k])
    tap_mat = jnp.concatenate(taps, axis=0).astype(jnp.bfloat16)
    z2 = dot(w2_ref[...], tap_mat)                           # (C, HW) f32

    z_ref[0] = z2.astype(z_ref.dtype)
    s_ref[0, :, 0:1] = jnp.sum(z2, axis=1, keepdims=True)
    s_ref[0, :, 1:2] = jnp.sum(z2 * z2, axis=1, keepdims=True)


# ----------------------------------------------------------------------------
# Kernel 3: final BatchNorm apply + LeakyReLU + residual add (lane-dense).
# ----------------------------------------------------------------------------
def _bn_act_residual_kernel(z_ref, x_ref, scale_ref, shift_ref, o_ref):
    h = z_ref[0].astype(jnp.float32) * scale_ref[...] + shift_ref[...]
    h = jnp.where(h >= 0.0, h, _LRELU_SLOPE * h)
    o_ref[0] = x_ref[0] + h


# ----------------------------------------------------------------------------
# Host-side constant tables.
# ----------------------------------------------------------------------------
def _dft2_operators(H, W):
    """Full 2D real-DFT forward/inverse operators (norm='ortho') acting on
    row-major-flattened (H*W) pixel rows.
      forward : (HW, 2*H*V) -> [Re | Im] of the (H, V) half spectrum
      inverse : (2*H*V, HW) -> irfft2 (imag of DC / W-Nyquist bins drops out
                 exactly, matching jnp.fft.irfft2).
    Intended for small H, W; production 80x80 should use the batched separable
    form instead (one (2H,2H) matmul over a (2H, C*V) layout)."""
    V = W // 2 + 1
    hh, ww = np.arange(H), np.arange(W)
    uu, vv = np.arange(H), np.arange(V)
    scale = 1.0 / math.sqrt(H * W)

    ang_f = (-2.0 * np.pi) * (np.outer(hh, uu)[:, None, :, None] / H
                              + np.outer(ww, vv)[None, :, None, :] / W)
    f_re = np.cos(ang_f) * scale                              # (H, W, H, V)
    f_im = np.sin(ang_f) * scale
    f_fwd = np.concatenate(
        [f_re.reshape(H * W, H * V), f_im.reshape(H * W, H * V)], axis=1)

    cv = np.full((V,), 2.0)
    cv[0] = 1.0
    if W % 2 == 0:
        cv[-1] = 1.0                                          # Nyquist bin
    ang_i = (2.0 * np.pi) * (np.outer(uu, hh)[:, None, :, None] / H
                             + np.outer(vv, ww)[None, :, None, :] / W)
    g_re = (cv[None, :, None, None] * np.cos(ang_i)) * scale  # (H, V, H, W)
    g_im = (-cv[None, :, None, None] * np.sin(ang_i)) * scale
    f_inv = np.concatenate(
        [g_re.reshape(H * V, H * W), g_im.reshape(H * V, H * W)], axis=0)

    return (jnp.asarray(f_fwd, jnp.bfloat16),
            jnp.asarray(f_inv, jnp.bfloat16))


def _conv_tap_tables(H, W, dilation):
    """Static lane offsets + f32 border masks for a 3x3 'same' conv on (C, H*W)."""
    pad = dilation
    offsets = []
    masks = np.zeros((9, 1, H * W), np.float32)
    hh, ww = np.meshgrid(np.arange(H), np.arange(W), indexing="ij")
    k = 0
    for kh in range(3):
        for kw in range(3):
            dh = kh * dilation - pad
            dw = kw * dilation - pad
            offsets.append(dh * W + dw)
            valid = ((hh + dh >= 0) & (hh + dh < H) &
                     (ww + dw >= 0) & (ww + dw < W))
            masks[k, 0] = valid.reshape(-1).astype(np.float32)
            k += 1
    return tuple(offsets), jnp.asarray(masks, jnp.float32)


# ----------------------------------------------------------------------------
# pallas_call wrappers.
# ----------------------------------------------------------------------------
def _filter_conv1(x_flat, complex_weight, w1_mat, H, W):
    B, C, HW = x_flat.shape
    V = W // 2 + 1
    HV = H * V
    f_fwd, f_inv = _dft2_operators(H, W)
    w_re = jnp.transpose(complex_weight[..., 0], (2, 0, 1)).reshape(C, HV)
    w_im = jnp.transpose(complex_weight[..., 1], (2, 0, 1)).reshape(C, HV)
    wpack = jnp.concatenate([w_re, w_im], axis=1).astype(jnp.float32)  # (C,2HV)
    offsets, masks = _conv_tap_tables(H, W, dilation=2)

    kernel = functools.partial(_filter_conv1_kernel, offsets=offsets, hv=HV)

    est = (2 * C * HW * 4                       # x block (double-buffered)
           + 2 * (C * HW * 2 + C * 2 * 4)       # outputs (double-buffered)
           + 2 * 2 * (HW * 2 * HV * 2)          # DFT operators
           + C * 2 * HV * 4 + 9 * C * C * 2 + 9 * HW * 4
           + 16 * C * HW * 4)                   # in-kernel temporaries
    flops = B * (4 * C * HW * 2 * HV + 6 * C * HV + 2 * C * 9 * C * HW)
    bytes_acc = (B * (C * HW * 4 + C * HW * 2 + C * 8)
                 + 2 * HW * 2 * HV * 2 + C * 2 * HV * 4 + 9 * C * C * 2)

    return pl.pallas_call(
        kernel,
        grid=(B,),
        in_specs=[
            pl.BlockSpec((1, C, HW), lambda b: (b, 0, 0)),
            pl.BlockSpec((HW, 2 * HV), lambda b: (0, 0)),
            pl.BlockSpec((2 * HV, HW), lambda b: (0, 0)),
            pl.BlockSpec((C, 2 * HV), lambda b: (0, 0)),
            pl.BlockSpec((C, 9 * C), lambda b: (0, 0)),
            pl.BlockSpec((9, 1, HW), lambda b: (0, 0, 0)),
        ],
        out_specs=[
            pl.BlockSpec((1, C, HW), lambda b: (b, 0, 0)),
            pl.BlockSpec((1, C, 2), lambda b: (b, 0, 0)),
        ],
        out_shape=[
            jax.ShapeDtypeStruct((B, C, HW), jnp.bfloat16),
            jax.ShapeDtypeStruct((B, C, 2), jnp.float32),
        ],
        compiler_params=_compiler_params(est),
        cost_estimate=pl.CostEstimate(flops=int(flops), transcendentals=0,
                                      bytes_accessed=int(bytes_acc)),
    )(x_flat, f_fwd, f_inv, wpack, w1_mat, masks)


def _conv2(a, scale, shift, w2_mat, H, W):
    B, C, HW = a.shape
    offsets, masks = _conv_tap_tables(H, W, dilation=1)
    kernel = functools.partial(_conv2_kernel, offsets=offsets)

    est = (2 * C * HW * 2 + 2 * (C * HW * 2 + C * 2 * 4)
           + 9 * C * C * 2 + 9 * HW * 4 + 16 * C * HW * 4)
    flops = B * 2 * C * 9 * C * HW
    bytes_acc = B * (2 * C * HW * 2 + C * 8) + 9 * C * C * 2

    return pl.pallas_call(
        kernel,
        grid=(B,),
        in_specs=[
            pl.BlockSpec((1, C, HW), lambda b: (b, 0, 0)),
            pl.BlockSpec((C, 1), lambda b: (0, 0)),
            pl.BlockSpec((C, 1), lambda b: (0, 0)),
            pl.BlockSpec((C, 9 * C), lambda b: (0, 0)),
            pl.BlockSpec((9, 1, HW), lambda b: (0, 0, 0)),
        ],
        out_specs=[
            pl.BlockSpec((1, C, HW), lambda b: (b, 0, 0)),
            pl.BlockSpec((1, C, 2), lambda b: (b, 0, 0)),
        ],
        out_shape=[
            jax.ShapeDtypeStruct((B, C, HW), jnp.bfloat16),
            jax.ShapeDtypeStruct((B, C, 2), jnp.float32),
        ],
        compiler_params=_compiler_params(est),
        cost_estimate=pl.CostEstimate(flops=int(flops), transcendentals=0,
                                      bytes_accessed=int(bytes_acc)),
    )(a, scale, shift, w2_mat, masks)


def _bn_act_residual(z, x_flat, scale, shift):
    B, C, HW = z.shape
    est = 2 * (C * HW * 2 + 2 * C * HW * 4) + 4 * C * 4
    return pl.pallas_call(
        _bn_act_residual_kernel,
        grid=(B,),
        in_specs=[
            pl.BlockSpec((1, C, HW), lambda b: (b, 0, 0)),
            pl.BlockSpec((1, C, HW), lambda b: (b, 0, 0)),
            pl.BlockSpec((C, 1), lambda b: (0, 0)),
            pl.BlockSpec((C, 1), lambda b: (0, 0)),
        ],
        out_specs=pl.BlockSpec((1, C, HW), lambda b: (b, 0, 0)),
        out_shape=jax.ShapeDtypeStruct((B, C, HW), jnp.float32),
        compiler_params=_compiler_params(est),
        cost_estimate=pl.CostEstimate(flops=int(4 * B * C * HW),
                                      transcendentals=0,
                                      bytes_accessed=int(B * C * HW * 10)),
    )(z, x_flat, scale, shift)


def _bn_affine(stats, gamma, beta, count):
    """Fold per-batch (sum, sum_sq) partials into BN scale/shift (training mode)."""
    s = jnp.sum(stats[:, :, 0], axis=0)
    ss = jnp.sum(stats[:, :, 1], axis=0)
    mean = s / count
    var = ss / count - mean * mean                    # biased variance
    scale = gamma * jax.lax.rsqrt(var + _BN_EPS)
    shift = beta - mean * scale
    return scale[:, None], shift[:, None]             # (C, 1)


# ----------------------------------------------------------------------------
# FreqBlock forward (NCHW in, NCHW out).
# ----------------------------------------------------------------------------
def freq_block_forward(x_nchw, params):
    B, C, H, W = x_nchw.shape
    HW = H * W
    x_f32 = x_nchw.astype(jnp.float32)
    x_flat = x_f32.reshape(B, C, HW)                  # free metadata reshape

    # Conv weights HWIO -> (Cout, 9*Cin) im2col matrices (bf16 MXU operands).
    # The conv biases are dropped: training-mode BatchNorm cancels them exactly
    # (the pure-JAX reference below keeps them to prove equivalence).
    w1_mat = jnp.transpose(params["w1"], (3, 0, 1, 2)).reshape(C, 9 * C)
    w2_mat = jnp.transpose(params["w2"], (3, 0, 1, 2)).reshape(C, 9 * C)
    w1_mat = w1_mat.astype(jnp.bfloat16)
    w2_mat = w2_mat.astype(jnp.bfloat16)

    # GlobalFilter + conv1 fused; z1 stored bf16, BN1 stats from f32 acc.
    z1, st1 = _filter_conv1(x_flat, params["complex_weight"], w1_mat, H, W)
    scale1, shift1 = _bn_affine(st1, params["g1"], params["be1"], B * HW)

    # BN1 + LeakyReLU fused into conv2; z2 stored bf16.
    z2, st2 = _conv2(z1, scale1, shift1, w2_mat, H, W)
    scale2, shift2 = _bn_affine(st2, params["g2"], params["be2"], B * HW)

    # BN2 + LeakyReLU + residual add on lane-dense (C, H*W) blocks.
    out = _bn_act_residual(z2, x_flat, scale2, shift2)
    return out.reshape(B, C, H, W)


# ----------------------------------------------------------------------------
# Pure-JAX reference (jnp.fft + lax.conv, with conv bias) for correctness.
# ----------------------------------------------------------------------------
def reference_forward(x_nchw, params):
    B, C, H, W = x_nchw.shape
    xp = jnp.transpose(x_nchw, (0, 2, 3, 1)).astype(jnp.float32)     # (B,H,W,C)
    Xf = jnp.fft.rfft2(xp, axes=(1, 2), norm="ortho")
    wc = params["complex_weight"][..., 0] + 1j * params["complex_weight"][..., 1]
    Xf = Xf * wc[None]
    yf = jnp.fft.irfft2(Xf, s=(H, W), axes=(1, 2), norm="ortho")

    def conv_bn_lrelu(inp, w, b, g, be, dil, pad):
        z = jax.lax.conv_general_dilated(
            inp, w, window_strides=(1, 1), padding=((pad, pad), (pad, pad)),
            rhs_dilation=(dil, dil),
            dimension_numbers=("NHWC", "HWIO", "NHWC"),
            precision=jax.lax.Precision.HIGHEST) + b.reshape(1, 1, 1, -1)
        mean = jnp.mean(z, axis=(0, 1, 2), keepdims=True)
        var = jnp.mean((z - mean) ** 2, axis=(0, 1, 2), keepdims=True)
        z = (z - mean) / jnp.sqrt(var + _BN_EPS) * g.reshape(1, 1, 1, -1) \
            + be.reshape(1, 1, 1, -1)
        return jnp.where(z >= 0, z, _LRELU_SLOPE * z)

    h1 = conv_bn_lrelu(yf, params["w1"], params["b1"], params["g1"],
                       params["be1"], 2, 2)
    h2 = conv_bn_lrelu(h1, params["w2"], params["b2"], params["g2"],
                       params["be2"], 1, 1)
    return jnp.transpose(xp + h2, (0, 3, 1, 2))


if __name__ == "__main__":
    B, C, H, W = 2, 8, 16, 16        # dim=8, 16x16 features (module: h=H, w=W//2+1)
    V = W // 2 + 1

    key = jax.random.PRNGKey(0)
    keys = jax.random.split(key, 10)
    x = jax.random.normal(keys[0], (B, C, H, W), jnp.float32)

    params = {
        "complex_weight": jax.random.normal(keys[1], (H, V, C, 2), jnp.float32) * 0.02,
        # Conv weights HWIO (3, 3, Cin, Cout); biases consumed only by the
        # reference (training-mode BatchNorm cancels them exactly).
        "w1": jax.random.normal(keys[2], (3, 3, C, C), jnp.float32) / math.sqrt(9 * C),
        "b1": jax.random.normal(keys[3], (C,), jnp.float32) * 0.05,
        "g1": 1.0 + 0.1 * jax.random.normal(keys[4], (C,), jnp.float32),
        "be1": 0.05 * jax.random.normal(keys[5], (C,), jnp.float32),
        "w2": jax.random.normal(keys[6], (3, 3, C, C), jnp.float32) / math.sqrt(9 * C),
        "b2": jax.random.normal(keys[7], (C,), jnp.float32) * 0.05,
        "g2": 1.0 + 0.1 * jax.random.normal(keys[8], (C,), jnp.float32),
        "be2": 0.05 * jax.random.normal(keys[9], (C,), jnp.float32),
    }

    out = jax.block_until_ready(jax.jit(freq_block_forward)(x, params))
    ref = jax.block_until_ready(reference_forward(x, params))

    np.testing.assert_allclose(np.asarray(out), np.asarray(ref),
                               rtol=5e-2, atol=5e-2)
    print("KERNEL_OK")
</pallas_src>

<mosaic_0001>
module attributes {stable_mosaic.version = 11 : i64} {
  func.func @_filter_conv1_kernel(%arg0: i32, %arg1: memref<1x8x256xf32, #tpu.memory_space<vmem>>, %arg2: memref<256x288xbf16, #tpu.memory_space<vmem>>, %arg3: memref<288x256xbf16, #tpu.memory_space<vmem>>, %arg4: memref<8x288xf32, #tpu.memory_space<vmem>>, %arg5: memref<8x72xbf16, #tpu.memory_space<vmem>>, %arg6: memref<9x1x256xf32, #tpu.memory_space<vmem>>, %arg7: memref<1x8x256xbf16, #tpu.memory_space<vmem>>, %arg8: memref<1x8x2xf32, #tpu.memory_space<vmem>>) attributes {dimension_semantics = [#tpu.dimension_semantics<parallel>], iteration_bounds = array<i64: 2>, scalar_prefetch = 0 : i64, scratch_operands = 0 : i64, tpu.core_type = #tpu.core_type<tc>, window_params = [{transform_indices = @transform_0, window_bounds = array<i64: 1, 8, 256>}, {pipeline_mode = #tpu.pipeline_mode<synchronous>, transform_indices = @transform_1, window_bounds = array<i64: 256, 288>}, {pipeline_mode = #tpu.pipeline_mode<synchronous>, transform_indices = @transform_2, window_bounds = array<i64: 288, 256>}, {pipeline_mode = #tpu.pipeline_mode<synchronous>, transform_indices = @transform_3, window_bounds = array<i64: 8, 288>}, {pipeline_mode = #tpu.pipeline_mode<synchronous>, transform_indices = @transform_4, window_bounds = array<i64: 8, 72>}, {pipeline_mode = #tpu.pipeline_mode<synchronous>, transform_indices = @transform_5, window_bounds = array<i64: 9, 1, 256>}, {transform_indices = @transform_6, window_bounds = array<i64: 1, 8, 256>}, {transform_indices = @transform_7, window_bounds = array<i64: 1, 8, 2>}]} {
    %c0 = arith.constant 0 : index
    %c0_0 = arith.constant 0 : index
    %c0_1 = arith.constant 0 : index
    %0 = vector.load %arg1[%c0, %c0_0, %c0_1] : memref<1x8x256xf32, #tpu.memory_space<vmem>>, vector<1x8x256xf32>
    %1 = vector.shape_cast %0 : vector<1x8x256xf32> to vector<8x256xf32>
    %2 = arith.truncf %1 : vector<8x256xf32> to vector<8x256xbf16>
    %c0_2 = arith.constant 0 : index
    %c0_3 = arith.constant 0 : index
    %3 = vector.load %arg2[%c0_2, %c0_3] : memref<256x288xbf16, #tpu.memory_space<vmem>>, vector<256x288xbf16>
    %cst = arith.constant dense<0.000000e+00> : vector<8x288xf32>
    %4 = tpu.matmul %2, %3, %cst {dimension_numbers = #tpu.dot_dimension_numbers<[1], [0], [0], [1], [0, 0, 1, 1], [], []>} : vector<8x256xbf16>, vector<256x288xbf16>, vector<8x288xf32> -> vector<8x288xf32>
    %5 = vector.extract_strided_slice %4 {offsets = [0, 0], sizes = [8, 144], strides = [1, 1]} : vector<8x288xf32> to vector<8x144xf32>
    %6 = vector.extract_strided_slice %4 {offsets = [0, 144], sizes = [8, 144], strides = [1, 1]} : vector<8x288xf32> to vector<8x144xf32>
    %c0_4 = arith.constant 0 : index
    %c0_5 = arith.constant 0 : index
    %7 = vector.load %arg4[%c0_4, %c0_5] : memref<8x288xf32, #tpu.memory_space<vmem>>, vector<8x144xf32>
    %c0_6 = arith.constant 0 : index
    %c144 = arith.constant 144 : index
    %8 = vector.load %arg4[%c0_6, %c144] : memref<8x288xf32, #tpu.memory_space<vmem>>, vector<8x144xf32>
    %9 = arith.mulf %5, %7 : vector<8x144xf32>
    %10 = arith.mulf %6, %8 : vector<8x144xf32>
    %11 = arith.subf %9, %10 : vector<8x144xf32>
    %12 = arith.mulf %5, %8 : vector<8x144xf32>
    %13 = arith.mulf %6, %7 : vector<8x144xf32>
    %14 = arith.addf %12, %13 : vector<8x144xf32>
    %15 = tpu.concatenate %11, %14 in 1 : vector<8x144xf32>, vector<8x144xf32> -> vector<8x288xf32>
    %16 = arith.truncf %15 : vector<8x288xf32> to vector<8x288xbf16>
    %c0_7 = arith.constant 0 : index
    %c0_8 = arith.constant 0 : index
    %17 = vector.load %arg3[%c0_7, %c0_8] : memref<288x256xbf16, #tpu.memory_space<vmem>>, vector<288x256xbf16>
    %cst_9 = arith.constant dense<0.000000e+00> : vector<8x256xf32>
    %18 = tpu.matmul %16, %17, %cst_9 {dimension_numbers = #tpu.dot_dimension_numbers<[1], [0], [0], [1], [0, 0, 1, 1], [], []>} : vector<8x288xbf16>, vector<288x256xbf16>, vector<8x256xf32> -> vector<8x256xf32>
    %c34_i32 = arith.constant 34 : i32
    %19 = tpu.dynamic_rotate %18 by %c34_i32 dim 1 : vector<8x256xf32>, i32 -> vector<8x256xf32>
    %c0_10 = arith.constant 0 : index
    %c0_11 = arith.constant 0 : index
    %c0_12 = arith.constant 0 : index
    %20 = vector.load %arg6[%c0_10, %c0_11, %c0_12] : memref<9x1x256xf32, #tpu.memory_space<vmem>>, vector<1x1x256xf32>
    %21 = vector.shape_cast %20 : vector<1x1x256xf32> to vector<1x256xf32>
    %22 = vector.broadcast %21 : vector<1x256xf32> to vector<8x256xf32>
    %23 = arith.mulf %19, %22 : vector<8x256xf32>
    %c32_i32 = arith.constant 32 : i32
    %24 = tpu.dynamic_rotate %18 by %c32_i32 dim 1 : vector<8x256xf32>, i32 -> vector<8x256xf32>
    %c1 = arith.constant 1 : index
    %c0_13 = arith.constant 0 : index
    %c0_14 = arith.constant 0 : index
    %25 = vector.load %arg6[%c1, %c0_13, %c0_14] : memref<9x1x256xf32, #tpu.memory_space<vmem>>, vector<1x1x256xf32>
    %26 = vector.shape_cast %25 : vector<1x1x256xf32> to vector<1x256xf32>
    %27 = vector.broadcast %26 : vector<1x256xf32> to vector<8x256xf32>
    %28 = arith.mulf %24, %27 : vector<8x256xf32>
    %c30_i32 = arith.constant 30 : i32
    %29 = tpu.dynamic_rotate %18 by %c30_i32 dim 1 : vector<8x256xf32>, i32 -> vector<8x256xf32>
    %c2 = arith.constant 2 : index
    %c0_15 = arith.constant 0 : index
    %c0_16 = arith.constant 0 : index
    %30 = vector.load %arg6[%c2, %c0_15, %c0_16] : memref<9x1x256xf32, #tpu.memory_space<vmem>>, vector<1x1x256xf32>
    %31 = vector.shape_cast %30 : vector<1x1x256xf32> to vector<1x256xf32>
    %32 = vector.broadcast %31 : vector<1x256xf32> to vector<8x256xf32>
    %33 = arith.mulf %29, %32 : vector<8x256xf32>
    %c2_i32 = arith.constant 2 : i32
    %34 = tpu.dynamic_rotate %18 by %c2_i32 dim 1 : vector<8x256xf32>, i32 -> vector<8x256xf32>
    %c3 = arith.constant 3 : index
    %c0_17 = arith.constant 0 : index
    %c0_18 = arith.constant 0 : index
    %35 = vector.load %arg6[%c3, %c0_17, %c0_18] : memref<9x1x256xf32, #tpu.memory_space<vmem>>, vector<1x1x256xf32>
    %36 = vector.shape_cast %35 : vector<1x1x256xf32> to vector<1x256xf32>
    %37 = vector.broadcast %36 : vector<1x256xf32> to vector<8x256xf32>
    %38 = arith.mulf %34, %37 : vector<8x256xf32>
    %c4 = arith.constant 4 : index
    %c0_19 = arith.constant 0 : index
    %c0_20 = arith.constant 0 : index
    %39 = vector.load %arg6[%c4, %c0_19, %c0_20] : memref<9x1x256xf32, #tpu.memory_space<vmem>>, vector<1x1x256xf32>
    %40 = vector.shape_cast %39 : vector<1x1x256xf32> to vector<1x256xf32>
    %41 = vector.broadcast %40 : vector<1x256xf32> to vector<8x256xf32>
    %42 = arith.mulf %18, %41 : vector<8x256xf32>
    %c254_i32 = arith.constant 254 : i32
    %43 = tpu.dynamic_rotate %18 by %c254_i32 dim 1 : vector<8x256xf32>, i32 -> vector<8x256xf32>
    %c5 = arith.constant 5 : index
    %c0_21 = arith.constant 0 : index
    %c0_22 = arith.constant 0 : index
    %44 = vector.load %arg6[%c5, %c0_21, %c0_22] : memref<9x1x256xf32, #tpu.memory_space<vmem>>, vector<1x1x256xf32>
    %45 = vector.shape_cast %44 : vector<1x1x256xf32> to vector<1x256xf32>
    %46 = vector.broadcast %45 : vector<1x256xf32> to vector<8x256xf32>
    %47 = arith.mulf %43, %46 : vector<8x256xf32>
    %c226_i32 = arith.constant 226 : i32
    %48 = tpu.dynamic_rotate %18 by %c226_i32 dim 1 : vector<8x256xf32>, i32 -> vector<8x256xf32>
    %c6 = arith.constant 6 : index
    %c0_23 = arith.constant 0 : index
    %c0_24 = arith.constant 0 : index
    %49 = vector.load %arg6[%c6, %c0_23, %c0_24] : memref<9x1x256xf32, #tpu.memory_space<vmem>>, vector<1x1x256xf32>
    %50 = vector.shape_cast %49 : vector<1x1x256xf32> to vector<1x256xf32>
    %51 = vector.broadcast %50 : vector<1x256xf32> to vector<8x256xf32>
    %52 = arith.mulf %48, %51 : vector<8x256xf32>
    %c224_i32 = arith.constant 224 : i32
    %53 = tpu.dynamic_rotate %18 by %c224_i32 dim 1 : vector<8x256xf32>, i32 -> vector<8x256xf32>
    %c7 = arith.constant 7 : index
    %c0_25 = arith.constant 0 : index
    %c0_26 = arith.constant 0 : index
    %54 = vector.load %arg6[%c7, %c0_25, %c0_26] : memref<9x1x256xf32, #tpu.memory_space<vmem>>, vector<1x1x256xf32>
    %55 = vector.shape_cast %54 : vector<1x1x256xf32> to vector<1x256xf32>
    %56 = vector.broadcast %55 : vector<1x256xf32> to vector<8x256xf32>
    %57 = arith.mulf %53, %56 : vector<8x256xf32>
    %c222_i32 = arith.constant 222 : i32
    %58 = tpu.dynamic_rotate %18 by %c222_i32 dim 1 : vector<8x256xf32>, i32 -> vector<8x256xf32>
    %c8 = arith.constant 8 : index
    %c0_27 = arith.constant 0 : index
    %c0_28 = arith.constant 0 : index
    %59 = vector.load %arg6[%c8, %c0_27, %c0_28] : memref<9x1x256xf32, #tpu.memory_space<vmem>>, vector<1x1x256xf32>
    %60 = vector.shape_cast %59 : vector<1x1x256xf32> to vector<1x256xf32>
    %61 = vector.broadcast %60 : vector<1x256xf32> to vector<8x256xf32>
    %62 = arith.mulf %58, %61 : vector<8x256xf32>
    %63 = tpu.concatenate %23, %28, %33, %38, %42, %47, %52, %57, %62 in 0 : vector<8x256xf32>, vector<8x256xf32>, vector<8x256xf32>, vector<8x256xf32>, vector<8x256xf32>, vector<8x256xf32>, vector<8x256xf32>, vector<8x256xf32>, vector<8x256xf32> -> vector<72x256xf32>
    %64 = arith.truncf %63 : vector<72x256xf32> to vector<72x256xbf16>
    %c0_29 = arith.constant 0 : index
    %c0_30 = arith.constant 0 : index
    %65 = vector.load %arg5[%c0_29, %c0_30] : memref<8x72xbf16, #tpu.memory_space<vmem>>, vector<8x72xbf16>
    %cst_31 = arith.constant dense<0.000000e+00> : vector<8x256xf32>
    %66 = tpu.matmul %65, %64, %cst_31 {dimension_numbers = #tpu.dot_dimension_numbers<[1], [0], [0], [1], [0, 0, 1, 1], [], []>} : vector<8x72xbf16>, vector<72x256xbf16>, vector<8x256xf32> -> vector<8x256xf32>
    %67 = arith.truncf %66 : vector<8x256xf32> to vector<8x256xbf16>
    %c0_32 = arith.constant 0 : index
    %c0_33 = arith.constant 0 : index
    %c0_34 = arith.constant 0 : index
    %68 = vector.load %arg7[%c0_32, %c0_33, %c0_34] : memref<1x8x256xbf16, #tpu.memory_space<vmem>>, vector<1x8x256xbf16>
    %69 = vector.shape_cast %68 : vector<1x8x256xbf16> to vector<8x256xbf16>
    %70 = vector.shape_cast %67 : vector<8x256xbf16> to vector<1x8x256xbf16>
    tpu.vector_store %arg7[%c0_32, %c0_33, %c0_34], %70 {strides = array<i32>} : memref<1x8x256xbf16, #tpu.memory_space<vmem>>, vector<1x8x256xbf16>,
    %cst_35 = arith.constant dense<0.000000e+00> : vector<8xf32>
    %71 = vector.multi_reduction <add>, %66, %cst_35 [1] : vector<8x256xf32> to vector<8xf32>
    %72 = vector.shape_cast %71 : vector<8xf32> to vector<8x1xf32>
    %c0_36 = arith.constant 0 : index
    %c0_37 = arith.constant 0 : index
    %c0_38 = arith.constant 0 : index
    %73 = vector.load %arg8[%c0_36, %c0_37, %c0_38] : memref<1x8x2xf32, #tpu.memory_space<vmem>>, vector<1x8x1xf32>
    %74 = vector.shape_cast %73 : vector<1x8x1xf32> to vector<8x1xf32>
    %75 = vector.shape_cast %72 : vector<8x1xf32> to vector<1x8x1xf32>
    tpu.vector_store %arg8[%c0_36, %c0_37, %c0_38], %75 {strides = array<i32>} : memref<1x8x2xf32, #tpu.memory_space<vmem>>, vector<1x8x1xf32>,
    %76 = arith.mulf %66, %66 : vector<8x256xf32>
    %cst_39 = arith.constant dense<0.000000e+00> : vector<8xf32>
    %77 = vector.multi_reduction <add>, %76, %cst_39 [1] : vector<8x256xf32> to vector<8xf32>
    %78 = vector.shape_cast %77 : vector<8xf32> to vector<8x1xf32>
    %c0_40 = arith.constant 0 : index
    %c0_41 = arith.constant 0 : index
    %c1_42 = arith.constant 1 : index
    %79 = vector.load %arg8[%c0_40, %c0_41, %c1_42] : memref<1x8x2xf32, #tpu.memory_space<vmem>>, vector<1x8x1xf32>
    %80 = vector.shape_cast %79 : vector<1x8x1xf32> to vector<8x1xf32>
    %81 = vector.shape_cast %78 : vector<8x1xf32> to vector<1x8x1xf32>
    tpu.vector_store %arg8[%c0_40, %c0_41, %c1_42], %81 {strides = array<i32>} : memref<1x8x2xf32, #tpu.memory_space<vmem>>, vector<1x8x1xf32>,
    return
  }
  func.func @transform_0(%arg0: i32) -> (i32, i32, i32) {
    %c0_i32 = arith.constant 0 : i32
    %c0_i32_0 = arith.constant 0 : i32
    %c0_i32_1 = arith.constant 0 : i32
    return %arg0, %c0_i32, %c0_i32_0 : i32, i32, i32
  }
  func.func @transform_1(%arg0: i32) -> (i32, i32) {
    %c0_i32 = arith.constant 0 : i32
    %c0_i32_0 = arith.constant 0 : i32
    %c0_i32_1 = arith.constant 0 : i32
    return %c0_i32, %c0_i32_0 : i32, i32
  }
  func.func @transform_2(%arg0: i32) -> (i32, i32) {
    %c0_i32 = arith.constant 0 : i32
    %c0_i32_0 = arith.constant 0 : i32
    %c0_i32_1 = arith.constant 0 : i32
    return %c0_i32, %c0_i32_0 : i32, i32
  }
  func.func @transform_3(%arg0: i32) -> (i32, i32) {
    %c0_i32 = arith.constant 0 : i32
    %c0_i32_0 = arith.constant 0 : i32
    %c0_i32_1 = arith.constant 0 : i32
    return %c0_i32, %c0_i32_0 : i32, i32
  }
  func.func @transform_4(%arg0: i32) -> (i32, i32) {
    %c0_i32 = arith.constant 0 : i32
    %c0_i32_0 = arith.constant 0 : i32
    %c0_i32_1 = arith.constant 0 : i32
    return %c0_i32, %c0_i32_0 : i32, i32
  }
  func.func @transform_5(%arg0: i32) -> (i32, i32, i32) {
    %c0_i32 = arith.constant 0 : i32
    %c0_i32_0 = arith.constant 0 : i32
    %c0_i32_1 = arith.constant 0 : i32
    %c0_i32_2 = arith.constant 0 : i32
    return %c0_i32, %c0_i32_0, %c0_i32_1 : i32, i32, i32
  }
  func.func @transform_6(%arg0: i32) -> (i32, i32, i32) {
    %c0_i32 = arith.constant 0 : i32
    %c0_i32_0 = arith.constant 0 : i32
    %c0_i32_1 = arith.constant 0 : i32
    return %arg0, %c0_i32, %c0_i32_0 : i32, i32, i32
  }
  func.func @transform_7(%arg0: i32) -> (i32, i32, i32) {
    %c0_i32 = arith.constant 0 : i32
    %c0_i32_0 = arith.constant 0 : i32
    %c0_i32_1 = arith.constant 0 : i32
    return %arg0, %c0_i32, %c0_i32_0 : i32, i32, i32
  }
}

module attributes {stable_mosaic.version = 11 : i64} {
  func.func @_conv2_kernel(%arg0: i32, %arg1: memref<1x8x256xbf16, #tpu.memory_space<vmem>>, %arg2: memref<8x1xf32, #tpu.memory_space<vmem>>, %arg3: memref<8x1xf32, #tpu.memory_space<vmem>>, %arg4: memref<8x72xbf16, #tpu.memory_space<vmem>>, %arg5: memref<9x1x256xf32, #tpu.memory_space<vmem>>, %arg6: memref<1x8x256xbf16, #tpu.memory_space<vmem>>, %arg7: memref<1x8x2xf32, #tpu.memory_space<vmem>>) attributes {dimension_semantics = [#tpu.dimension_semantics<parallel>], iteration_bounds = array<i64: 2>, scalar_prefetch = 0 : i64, scratch_operands = 0 : i64, tpu.core_type = #tpu.core_type<tc>, window_params = [{transform_indices = @transform_0, window_bounds = array<i64: 1, 8, 256>}, {pipeline_mode = #tpu.pipeline_mode<synchronous>, transform_indices = @transform_1, window_bounds = array<i64: 8, 1>}, {pipeline_mode = #tpu.pipeline_mode<synchronous>, transform_indices = @transform_2, window_bounds = array<i64: 8, 1>}, {pipeline_mode = #tpu.pipeline_mode<synchronous>, transform_indices = @transform_3, window_bounds = array<i64: 8, 72>}, {pipeline_mode = #tpu.pipeline_mode<synchronous>, transform_indices = @transform_4, window_bounds = array<i64: 9, 1, 256>}, {transform_indices = @transform_5, window_bounds = array<i64: 1, 8, 256>}, {transform_indices = @transform_6, window_bounds = array<i64: 1, 8, 2>}]} {
    %c0 = arith.constant 0 : index
    %c0_0 = arith.constant 0 : index
    %c0_1 = arith.constant 0 : index
    %0 = vector.load %arg1[%c0, %c0_0, %c0_1] : memref<1x8x256xbf16, #tpu.memory_space<vmem>>, vector<1x8x256xbf16>
    %1 = vector.shape_cast %0 : vector<1x8x256xbf16> to vector<8x256xbf16>
    %2 = arith.extf %1 : vector<8x256xbf16> to vector<8x256xf32>
    %c0_2 = arith.constant 0 : index
    %c0_3 = arith.constant 0 : index
    %3 = vector.load %arg2[%c0_2, %c0_3] : memref<8x1xf32, #tpu.memory_space<vmem>>, vector<8x1xf32>
    %4 = vector.broadcast %3 : vector<8x1xf32> to vector<8x256xf32>
    %5 = arith.mulf %2, %4 : vector<8x256xf32>
    %c0_4 = arith.constant 0 : index
    %c0_5 = arith.constant 0 : index
    %6 = vector.load %arg3[%c0_4, %c0_5] : memref<8x1xf32, #tpu.memory_space<vmem>>, vector<8x1xf32>
    %7 = vector.broadcast %6 : vector<8x1xf32> to vector<8x256xf32>
    %8 = arith.addf %5, %7 : vector<8x256xf32>
    %cst = arith.constant 0.000000e+00 : f32
    %9 = vector.broadcast %cst : f32 to vector<8x256xf32>
    %10 = arith.cmpf oge, %8, %9 : vector<8x256xf32>
    %cst_6 = arith.constant 2.000000e-01 : f32
    %11 = vector.broadcast %cst_6 : f32 to vector<8x256xf32>
    %12 = arith.mulf %11, %8 : vector<8x256xf32>
    %13 = arith.select %10, %8, %12 : vector<8x256xi1>, vector<8x256xf32>
    %c17_i32 = arith.constant 17 : i32
    %14 = tpu.dynamic_rotate %13 by %c17_i32 dim 1 : vector<8x256xf32>, i32 -> vector<8x256xf32>
    %c0_7 = arith.constant 0 : index
    %c0_8 = arith.constant 0 : index
    %c0_9 = arith.constant 0 : index
    %15 = vector.load %arg5[%c0_7, %c0_8, %c0_9] : memref<9x1x256xf32, #tpu.memory_space<vmem>>, vector<1x1x256xf32>
    %16 = vector.shape_cast %15 : vector<1x1x256xf32> to vector<1x256xf32>
    %17 = vector.broadcast %16 : vector<1x256xf32> to vector<8x256xf32>
    %18 = arith.mulf %14, %17 : vector<8x256xf32>
    %c16_i32 = arith.constant 16 : i32
    %19 = tpu.dynamic_rotate %13 by %c16_i32 dim 1 : vector<8x256xf32>, i32 -> vector<8x256xf32>
    %c1 = arith.constant 1 : index
    %c0_10 = arith.constant 0 : index
    %c0_11 = arith.constant 0 : index
    %20 = vector.load %arg5[%c1, %c0_10, %c0_11] : memref<9x1x256xf32, #tpu.memory_space<vmem>>, vector<1x1x256xf32>
    %21 = vector.shape_cast %20 : vector<1x1x256xf32> to vector<1x256xf32>
    %22 = vector.broadcast %21 : vector<1x256xf32> to vector<8x256xf32>
    %23 = arith.mulf %19, %22 : vector<8x256xf32>
    %c15_i32 = arith.constant 15 : i32
    %24 = tpu.dynamic_rotate %13 by %c15_i32 dim 1 : vector<8x256xf32>, i32 -> vector<8x256xf32>
    %c2 = arith.constant 2 : index
    %c0_12 = arith.constant 0 : index
    %c0_13 = arith.constant 0 : index
    %25 = vector.load %arg5[%c2, %c0_12, %c0_13] : memref<9x1x256xf32, #tpu.memory_space<vmem>>, vector<1x1x256xf32>
    %26 = vector.shape_cast %25 : vector<1x1x256xf32> to vector<1x256xf32>
    %27 = vector.broadcast %26 : vector<1x256xf32> to vector<8x256xf32>
    %28 = arith.mulf %24, %27 : vector<8x256xf32>
    %c1_i32 = arith.constant 1 : i32
    %29 = tpu.dynamic_rotate %13 by %c1_i32 dim 1 : vector<8x256xf32>, i32 -> vector<8x256xf32>
    %c3 = arith.constant 3 : index
    %c0_14 = arith.constant 0 : index
    %c0_15 = arith.constant 0 : index
    %30 = vector.load %arg5[%c3, %c0_14, %c0_15] : memref<9x1x256xf32, #tpu.memory_space<vmem>>, vector<1x1x256xf32>
    %31 = vector.shape_cast %30 : vector<1x1x256xf32> to vector<1x256xf32>
    %32 = vector.broadcast %31 : vector<1x256xf32> to vector<8x256xf32>
    %33 = arith.mulf %29, %32 : vector<8x256xf32>
    %c4 = arith.constant 4 : index
    %c0_16 = arith.constant 0 : index
    %c0_17 = arith.constant 0 : index
    %34 = vector.load %arg5[%c4, %c0_16, %c0_17] : memref<9x1x256xf32, #tpu.memory_space<vmem>>, vector<1x1x256xf32>
    %35 = vector.shape_cast %34 : vector<1x1x256xf32> to vector<1x256xf32>
    %36 = vector.broadcast %35 : vector<1x256xf32> to vector<8x256xf32>
    %37 = arith.mulf %13, %36 : vector<8x256xf32>
    %c255_i32 = arith.constant 255 : i32
    %38 = tpu.dynamic_rotate %13 by %c255_i32 dim 1 : vector<8x256xf32>, i32 -> vector<8x256xf32>
    %c5 = arith.constant 5 : index
    %c0_18 = arith.constant 0 : index
    %c0_19 = arith.constant 0 : index
    %39 = vector.load %arg5[%c5, %c0_18, %c0_19] : memref<9x1x256xf32, #tpu.memory_space<vmem>>, vector<1x1x256xf32>
    %40 = vector.shape_cast %39 : vector<1x1x256xf32> to vector<1x256xf32>
    %41 = vector.broadcast %40 : vector<1x256xf32> to vector<8x256xf32>
    %42 = arith.mulf %38, %41 : vector<8x256xf32>
    %c241_i32 = arith.constant 241 : i32
    %43 = tpu.dynamic_rotate %13 by %c241_i32 dim 1 : vector<8x256xf32>, i32 -> vector<8x256xf32>
    %c6 = arith.constant 6 : index
    %c0_20 = arith.constant 0 : index
    %c0_21 = arith.constant 0 : index
    %44 = vector.load %arg5[%c6, %c0_20, %c0_21] : memref<9x1x256xf32, #tpu.memory_space<vmem>>, vector<1x1x256xf32>
    %45 = vector.shape_cast %44 : vector<1x1x256xf32> to vector<1x256xf32>
    %46 = vector.broadcast %45 : vector<1x256xf32> to vector<8x256xf32>
    %47 = arith.mulf %43, %46 : vector<8x256xf32>
    %c240_i32 = arith.constant 240 : i32
    %48 = tpu.dynamic_rotate %13 by %c240_i32 dim 1 : vector<8x256xf32>, i32 -> vector<8x256xf32>
    %c7 = arith.constant 7 : index
    %c0_22 = arith.constant 0 : index
    %c0_23 = arith.constant 0 : index
    %49 = vector.load %arg5[%c7, %c0_22, %c0_23] : memref<9x1x256xf32, #tpu.memory_space<vmem>>, vector<1x1x256xf32>
    %50 = vector.shape_cast %49 : vector<1x1x256xf32> to vector<1x256xf32>
    %51 = vector.broadcast %50 : vector<1x256xf32> to vector<8x256xf32>
    %52 = arith.mulf %48, %51 : vector<8x256xf32>
    %c239_i32 = arith.constant 239 : i32
    %53 = tpu.dynamic_rotate %13 by %c239_i32 dim 1 : vector<8x256xf32>, i32 -> vector<8x256xf32>
    %c8 = arith.constant 8 : index
    %c0_24 = arith.constant 0 : index
    %c0_25 = arith.constant 0 : index
    %54 = vector.load %arg5[%c8, %c0_24, %c0_25] : memref<9x1x256xf32, #tpu.memory_space<vmem>>, vector<1x1x256xf32>
    %55 = vector.shape_cast %54 : vector<1x1x256xf32> to vector<1x256xf32>
    %56 = vector.broadcast %55 : vector<1x256xf32> to vector<8x256xf32>
    %57 = arith.mulf %53, %56 : vector<8x256xf32>
    %58 = tpu.concatenate %18, %23, %28, %33, %37, %42, %47, %52, %57 in 0 : vector<8x256xf32>, vector<8x256xf32>, vector<8x256xf32>, vector<8x256xf32>, vector<8x256xf32>, vector<8x256xf32>, vector<8x256xf32>, vector<8x256xf32>, vector<8x256xf32> -> vector<72x256xf32>
    %59 = arith.truncf %58 : vector<72x256xf32> to vector<72x256xbf16>
    %c0_26 = arith.constant 0 : index
    %c0_27 = arith.constant 0 : index
    %60 = vector.load %arg4[%c0_26, %c0_27] : memref<8x72xbf16, #tpu.memory_space<vmem>>, vector<8x72xbf16>
    %cst_28 = arith.constant dense<0.000000e+00> : vector<8x256xf32>
    %61 = tpu.matmul %60, %59, %cst_28 {dimension_numbers = #tpu.dot_dimension_numbers<[1], [0], [0], [1], [0, 0, 1, 1], [], []>} : vector<8x72xbf16>, vector<72x256xbf16>, vector<8x256xf32> -> vector<8x256xf32>
    %62 = arith.truncf %61 : vector<8x256xf32> to vector<8x256xbf16>
    %c0_29 = arith.constant 0 : index
    %c0_30 = arith.constant 0 : index
    %c0_31 = arith.constant 0 : index
    %63 = vector.load %arg6[%c0_29, %c0_30, %c0_31] : memref<1x8x256xbf16, #tpu.memory_space<vmem>>, vector<1x8x256xbf16>
    %64 = vector.shape_cast %63 : vector<1x8x256xbf16> to vector<8x256xbf16>
    %65 = vector.shape_cast %62 : vector<8x256xbf16> to vector<1x8x256xbf16>
    tpu.vector_store %arg6[%c0_29, %c0_30, %c0_31], %65 {strides = array<i32>} : memref<1x8x256xbf16, #tpu.memory_space<vmem>>, vector<1x8x256xbf16>,
    %cst_32 = arith.constant dense<0.000000e+00> : vector<8xf32>
    %66 = vector.multi_reduction <add>, %61, %cst_32 [1] : vector<8x256xf32> to vector<8xf32>
    %67 = vector.shape_cast %66 : vector<8xf32> to vector<8x1xf32>
    %c0_33 = arith.constant 0 : index
    %c0_34 = arith.constant 0 : index
    %c0_35 = arith.constant 0 : index
    %68 = vector.load %arg7[%c0_33, %c0_34, %c0_35] : memref<1x8x2xf32, #tpu.memory_space<vmem>>, vector<1x8x1xf32>
    %69 = vector.shape_cast %68 : vector<1x8x1xf32> to vector<8x1xf32>
    %70 = vector.shape_cast %67 : vector<8x1xf32> to vector<1x8x1xf32>
    tpu.vector_store %arg7[%c0_33, %c0_34, %c0_35], %70 {strides = array<i32>} : memref<1x8x2xf32, #tpu.memory_space<vmem>>, vector<1x8x1xf32>,
    %71 = arith.mulf %61, %61 : vector<8x256xf32>
    %cst_36 = arith.constant dense<0.000000e+00> : vector<8xf32>
    %72 = vector.multi_reduction <add>, %71, %cst_36 [1] : vector<8x256xf32> to vector<8xf32>
    %73 = vector.shape_cast %72 : vector<8xf32> to vector<8x1xf32>
    %c0_37 = arith.constant 0 : index
    %c0_38 = arith.constant 0 : index
    %c1_39 = arith.constant 1 : index
    %74 = vector.load %arg7[%c0_37, %c0_38, %c1_39] : memref<1x8x2xf32, #tpu.memory_space<vmem>>, vector<1x8x1xf32>
    %75 = vector.shape_cast %74 : vector<1x8x1xf32> to vector<8x1xf32>
    %76 = vector.shape_cast %73 : vector<8x1xf32> to vector<1x8x1xf32>
    tpu.vector_store %arg7[%c0_37, %c0_38, %c1_39], %76 {strides = array<i32>} : memref<1x8x2xf32, #tpu.memory_space<vmem>>, vector<1x8x1xf32>,
    return
  }
  func.func @transform_0(%arg0: i32) -> (i32, i32, i32) {
    %c0_i32 = arith.constant 0 : i32
    %c0_i32_0 = arith.constant 0 : i32
    %c0_i32_1 = arith.constant 0 : i32
    return %arg0, %c0_i32, %c0_i32_0 : i32, i32, i32
  }
  func.func @transform_1(%arg0: i32) -> (i32, i32) {
    %c0_i32 = arith.constant 0 : i32
    %c0_i32_0 = arith.constant 0 : i32
    %c0_i32_1 = arith.constant 0 : i32
    return %c0_i32, %c0_i32_0 : i32, i32
  }
  func.func @transform_2(%arg0: i32) -> (i32, i32) {
    %c0_i32 = arith.constant 0 : i32
    %c0_i32_0 = arith.constant 0 : i32
    %c0_i32_1 = arith.constant 0 : i32
    return %c0_i32, %c0_i32_0 : i32, i32
  }
  func.func @transform_3(%arg0: i32) -> (i32, i32) {
    %c0_i32 = arith.constant 0 : i32
    %c0_i32_0 = arith.constant 0 : i32
    %c0_i32_1 = arith.constant 0 : i32
    return %c0_i32, %c0_i32_0 : i32, i32
  }
  func.func @transform_4(%arg0: i32) -> (i32, i32, i32) {
    %c0_i32 = arith.constant 0 : i32
    %c0_i32_0 = arith.constant 0 : i32
    %c0_i32_1 = arith.constant 0 : i32
    %c0_i32_2 = arith.constant 0 : i32
    return %c0_i32, %c0_i32_0, %c0_i32_1 : i32, i32, i32
  }
  func.func @transform_5(%arg0: i32) -> (i32, i32, i32) {
    %c0_i32 = arith.constant 0 : i32
    %c0_i32_0 = arith.constant 0 : i32
    %c0_i32_1 = arith.constant 0 : i32
    return %arg0, %c0_i32, %c0_i32_0 : i32, i32, i32
  }
  func.func @transform_6(%arg0: i32) -> (i32, i32, i32) {
    %c0_i32 = arith.constant 0 : i32
    %c0_i32_0 = arith.constant 0 : i32
    %c0_i32_1 = arith.constant 0 : i32
    return %arg0, %c0_i32, %c0_i32_0 : i32, i32, i32
  }
}

module attributes {stable_mosaic.version = 11 : i64} {
  func.func @_bn_act_residual_kernel(%arg0: i32, %arg1: memref<1x8x256xbf16, #tpu.memory_space<vmem>>, %arg2: memref<1x8x256xf32, #tpu.memory_space<vmem>>, %arg3: memref<8x1xf32, #tpu.memory_space<vmem>>, %arg4: memref<8x1xf32, #tpu.memory_space<vmem>>, %arg5: memref<1x8x256xf32, #tpu.memory_space<vmem>>) attributes {dimension_semantics = [#tpu.dimension_semantics<parallel>], iteration_bounds = array<i64: 2>, scalar_prefetch = 0 : i64, scratch_operands = 0 : i64, tpu.core_type = #tpu.core_type<tc>, window_params = [{transform_indices = @transform_0, window_bounds = array<i64: 1, 8, 256>}, {transform_indices = @transform_1, window_bounds = array<i64: 1, 8, 256>}, {pipeline_mode = #tpu.pipeline_mode<synchronous>, transform_indices = @transform_2, window_bounds = array<i64: 8, 1>}, {pipeline_mode = #tpu.pipeline_mode<synchronous>, transform_indices = @transform_3, window_bounds = array<i64: 8, 1>}, {transform_indices = @transform_4, window_bounds = array<i64: 1, 8, 256>}]} {
    %c0 = arith.constant 0 : index
    %c0_0 = arith.constant 0 : index
    %c0_1 = arith.constant 0 : index
    %0 = vector.load %arg1[%c0, %c0_0, %c0_1] : memref<1x8x256xbf16, #tpu.memory_space<vmem>>, vector<1x8x256xbf16>
    %1 = vector.shape_cast %0 : vector<1x8x256xbf16> to vector<8x256xbf16>
    %2 = arith.extf %1 : vector<8x256xbf16> to vector<8x256xf32>
    %c0_2 = arith.constant 0 : index
    %c0_3 = arith.constant 0 : index
    %3 = vector.load %arg3[%c0_2, %c0_3] : memref<8x1xf32, #tpu.memory_space<vmem>>, vector<8x1xf32>
    %4 = vector.broadcast %3 : vector<8x1xf32> to vector<8x256xf32>
    %5 = arith.mulf %2, %4 : vector<8x256xf32>
    %c0_4 = arith.constant 0 : index
    %c0_5 = arith.constant 0 : index
    %6 = vector.load %arg4[%c0_4, %c0_5] : memref<8x1xf32, #tpu.memory_space<vmem>>, vector<8x1xf32>
    %7 = vector.broadcast %6 : vector<8x1xf32> to vector<8x256xf32>
    %8 = arith.addf %5, %7 : vector<8x256xf32>
    %cst = arith.constant 0.000000e+00 : f32
    %9 = vector.broadcast %cst : f32 to vector<8x256xf32>
    %10 = arith.cmpf oge, %8, %9 : vector<8x256xf32>
    %cst_6 = arith.constant 2.000000e-01 : f32
    %11 = vector.broadcast %cst_6 : f32 to vector<8x256xf32>
    %12 = arith.mulf %11, %8 : vector<8x256xf32>
    %13 = arith.select %10, %8, %12 : vector<8x256xi1>, vector<8x256xf32>
    %c0_7 = arith.constant 0 : index
    %c0_8 = arith.constant 0 : index
    %c0_9 = arith.constant 0 : index
    %14 = vector.load %arg2[%c0_7, %c0_8, %c0_9] : memref<1x8x256xf32, #tpu.memory_space<vmem>>, vector<1x8x256xf32>
    %15 = vector.shape_cast %14 : vector<1x8x256xf32> to vector<8x256xf32>
    %16 = arith.addf %15, %13 : vector<8x256xf32>
    %c0_10 = arith.constant 0 : index
    %c0_11 = arith.constant 0 : index
    %c0_12 = arith.constant 0 : index
    %17 = vector.load %arg5[%c0_10, %c0_11, %c0_12] : memref<1x8x256xf32, #tpu.memory_space<vmem>>, vector<1x8x256xf32>
    %18 = vector.shape_cast %17 : vector<1x8x256xf32> to vector<8x256xf32>
    %19 = vector.shape_cast %16 : vector<8x256xf32> to vector<1x8x256xf32>
    tpu.vector_store %arg5[%c0_10, %c0_11, %c0_12], %19 {strides = array<i32>} : memref<1x8x256xf32, #tpu.memory_space<vmem>>, vector<1x8x256xf32>,
    return
  }
  func.func @transform_0(%arg0: i32) -> (i32, i32, i32) {
    %c0_i32 = arith.constant 0 : i32
    %c0_i32_0 = arith.constant 0 : i32
    %c0_i32_1 = arith.constant 0 : i32
    return %arg0, %c0_i32, %c0_i32_0 : i32, i32, i32
  }
  func.func @transform_1(%arg0: i32) -> (i32, i32, i32) {
    %c0_i32 = arith.constant 0 : i32
    %c0_i32_0 = arith.constant 0 : i32
    %c0_i32_1 = arith.constant 0 : i32
    return %arg0, %c0_i32, %c0_i32_0 : i32, i32, i32
  }
  func.func @transform_2(%arg0: i32) -> (i32, i32) {
    %c0_i32 = arith.constant 0 : i32
    %c0_i32_0 = arith.constant 0 : i32
    %c0_i32_1 = arith.constant 0 : i32
    return %c0_i32, %c0_i32_0 : i32, i32
  }
  func.func @transform_3(%arg0: i32) -> (i32, i32) {
    %c0_i32 = arith.constant 0 : i32
    %c0_i32_0 = arith.constant 0 : i32
    %c0_i32_1 = arith.constant 0 : i32
    return %c0_i32, %c0_i32_0 : i32, i32
  }
  func.func @transform_4(%arg0: i32) -> (i32, i32, i32) {
    %c0_i32 = arith.constant 0 : i32
    %c0_i32_0 = arith.constant 0 : i32
    %c0_i32_1 = arith.constant 0 : i32
    return %arg0, %c0_i32, %c0_i32_0 : i32, i32, i32
  }
}

</mosaic_0001>

<bundles_post_ra>
// kernel: freq_block_forward.5
= control target key start
LH: loop header
LB: loop body
LE: loop exit
PB: predicated region body
PF: predicated region fallthrough
CT: control target
= control target key end

     0   :  { %s376_s15 = smov 0   ;;  %s402_s0 = inlined_call_operand.vmem [shape: bf16[2,8,256], index: 0, kind: input, shape index: {}]   ;;  %s403_s1 = inlined_call_operand.vmem [shape: f32[2,8,256], index: 1, kind: input, shape index: {}]   ;;  %s404_s2 = inlined_call_operand.vmem [shape: f32[8,1], index: 2, kind: input, shape index: {}]   ;;  %s405_s3 = inlined_call_operand.vmem [shape: f32[8,1], index: 3, kind: input, shape index: {}]   ;;  %s406_s4 = inlined_call_operand.vmem [shape: f32[2,8,256], index: 4, kind: output, shape index: {}]  }
   0x1 LB: > { %s316_s16 = sadd.s32 4294967295, %s348_s15   ;;  %p320_p0 = scmp.ge.s32.totalorder %s348_s15, 1  ;;  %s348_s15 = sphi %s376_s15, %s14_s15  }
   0x2   : > { %p172_p1 = scmp.lt.s32.totalorder %s348_s15, 3 }
   0x4   : > { %p173_p2 = pnand %p320_p0, %p172_p1 }
   0x5   : > { %v221_v0 = vld [vmem:[%s404_s2] sm:$0xff] (!%p173_p2)  ;;  %v350_v1 = vmov (!%p173_p2), 0   ;;  %p203_p3 = scmp.lt.s32.totalorder (!%p173_p2), %s316_s16, 1 }
   0x6   : > { %176 = sbr.rel (%p173_p2) target bundleno = 147 (0x93), region = 36  ;;  %341 = vset.pattern.permute.xlu0 (!%p173_p2), %v350_v1  ;;  %v229_v2 = vld [vmem:[%s405_s3] sm:$0xff] (!%p173_p2) }
   0x7   : > { %224 = vperm.xlu0 (!%p173_p2), %341, %v221_v0  }
   0xb   : > { %232 = vperm.xlu0 (!%p173_p2), %341, %v229_v2  }
   0xd   : > { %s408_s16 = smov (!%p203_p3, %s316_s16), 1 }
   0xe   : > { %s329_s21 = sshll.u32 %s408_s16, 3  ;;  %s330_s25 = sshll.u32 %s408_s16, 4 }
   0xf   : > { %s207_s24 = scalar_lea.vmem %s402_s0, %s329_s21  ;;  %s212_s28 = scalar_lea.vmem %s403_s1, %s330_s25 }
  0x10   : > { %v218_v3 = vld [vmem:[%s207_s24] sm:$0xff]  ;;  %v244_v13 = vld [vmem:[%s212_s28 + $0x8] sm:$0xff]  ;;  %s217_s5 = scalar_lea.vmem %s406_s4, %s330_s25 }
  0x11   : > { %v219_v4 = vunpack.c.l.bf16 %v218_v3  ;;  %v220_v5 = vunpack.c.h.bf16 %v218_v3  ;;  %v243_v12 = vld [vmem:[%s212_s28] sm:$0xff] }
  0x86   : > { %v225_v6 = vpop.permute.xlu0 %224 }
  0x87   : > { %v227_v7 = vmul.f32 %v225_v6, %v219_v4  ;;  %v228_v8 = vmul.f32 %v225_v6, %v220_v5 }
  0x8a   : > { %v233_v9 = vpop.permute.xlu0 %232 }
  0x8b   : > { %v235_v10 = vadd.f32 %v233_v9, %v227_v7  ;;  %v236_v11 = vadd.f32 %v233_v9, %v228_v8 }
  0x8d   : > { %vm237_vm0 = vcmp.ge.f32.partialorder %v235_v10, 0.0  ;;  %vm238_vm1 = vcmp.ge.f32.partialorder %v236_v11, 0.0  ;;  %v239_v14 = vmul.f32 0.2, %v235_v10  ;;  %v240_v15 = vmul.f32 0.2, %v236_v11 }
  0x8f   : > { %v241_v16 = vsel %vm237_vm0, %v235_v10, %v239_v14  ;;  %v242_v17 = vsel %vm238_vm1, %v236_v11, %v240_v15 }
  0x90   : > { %v245_v18 = vadd.f32 %v243_v12, %v241_v16  ;;  %v246_v19 = vadd.f32 %v244_v13, %v242_v17 }
  0x92   : > { %247 = vst [vmem:[%s217_s5] sm:$0xff] %v245_v18  ;;  %248 = vst [vmem:[%s217_s5 + $0x8] sm:$0xff] %v246_v19 }
  0x93 PF: > { %s14_s15 = sadd.s32 1, %s348_s15  }
  0x94   : > { %p11_p4 = scmp.ge.s32.totalorder %s14_s15, 4  }
  0x96   :  { %13 = sbr.rel (!%p11_p4) target bundleno = 1 (0x1), region = 69 }

// kernel: freq_block_forward.4
= control target key start
LH: loop header
LB: loop body
LE: loop exit
PB: predicated region body
PF: predicated region fallthrough
CT: control target
= control target key end

     0   :  { %s747_s21 = smov 0   ;;  %s866_s0 = inlined_call_operand.vmem [shape: bf16[2,8,256], index: 0, kind: input, shape index: {}]   ;;  %s867_s1 = inlined_call_operand.vmem [shape: f32[8,1], index: 1, kind: input, shape index: {}]   ;;  %s868_s2 = inlined_call_operand.vmem [shape: f32[8,1], index: 2, kind: input, shape index: {}]   ;;  %s869_s3 = inlined_call_operand.vmem [shape: bf16[8,72], index: 3, kind: input, shape index: {}]   ;;  %s870_s4 = inlined_call_operand.vmem [shape: f32[9,1,256], index: 4, kind: input, shape index: {}]   ;;  %s871_s5 = inlined_call_operand.vmem [shape: bf16[2,8,256], index: 5, kind: output, shape index: {0}]   ;;  %s872_s6 = inlined_call_operand.vmem [shape: f32[2,8,2], index: 6, kind: output, shape index: {1}]  }
   0x1 LB: > { %s651_s22 = sadd.s32 4294967295, %s701_s21   ;;  %p655_p0 = scmp.ge.s32.totalorder %s701_s21, 1  ;;  %s701_s21 = sphi %s747_s21, %s17_s21  }
   0x2   : > { %p215_p1 = scmp.lt.s32.totalorder %s701_s21, 3 }
   0x4   : > { %p216_p2 = pnand %p655_p0, %p215_p1 }
   0x5   : > { %v267_v0 = vld [vmem:[%s867_s1] sm:$0xff] (!%p216_p2)  ;;  %v703_v1 = vmov (!%p216_p2), 0   ;;  %p249_p3 = scmp.lt.s32.totalorder (!%p216_p2), %s651_s22, 1  ;;  %s704_s7 = smov (!%p216_p2), 16   ;;  %v293_v16 = vlaneseq (!%p216_p2)  ;;  %v664_v47 = vld [vmem:[%s870_s4 + $0x8] sm:$0x3] (!%p216_p2) }
   0x6   : > { %219 = sbr.rel (%p216_p2) target bundleno = 660 (0x294), region = 40  ;;  %694 = vset.pattern.permute.xlu0 (!%p216_p2), %v703_v1  ;;  %535 = vmatprep.mubr.bf16.mxu0 (!%p216_p2), %v703_v1  ;;  %v275_v2 = vld [vmem:[%s868_s2] sm:$0xff] (!%p216_p2)  ;;  %s705_s8 = smov (!%p216_p2), 17   ;;  %v665_v52 = vld [vmem:[%s870_s4 + $0xa] sm:$0x3] (!%p216_p2)  ;;  %vm496_vm10 = vcmask (!%p216_p2), 1043456  }
   0x7   : > { %270 = vperm.xlu0 (!%p216_p2), %694, %v267_v0   ;;  %s706_s9 = smov (!%p216_p2), 15   ;;  %s707_s10 = smov (!%p216_p2), 1   ;;  %v301_v17 = vshrl.u32 (!%p216_p2), %v293_v16, 7  ;;  %v787_v20 = vand.u32 (!%p216_p2), 127, %v293_v16  ;;  %v298_v21 = vld [vmem:[%s870_s4] sm:$0x3] (!%p216_p2) }
   0x8   : > { %s708_s11 = smov (!%p216_p2), 127   ;;  %s709_s12 = smov (!%p216_p2), 113   ;;  %v661_v23 = vld [vmem:[%s870_s4 + $0x2] sm:$0x3] (!%p216_p2)  ;;  %v662_v39 = vld [vmem:[%s870_s4 + $0x4] sm:$0x3] (!%p216_p2) }
   0x9   : > { %s710_s13 = smov (!%p216_p2), 112   ;;  %s711_s14 = smov (!%p216_p2), 111   ;;  %v792_v22 = vsub.s32 (!%p216_p2), 0, %v301_v17  ;;  %vm295_vm2 = vcmp.lt.s32.totalorder (!%p216_p2), %v787_v20, 17  ;;  %v798_v25 = vsub.s32 (!%p216_p2), 1, %v301_v17  ;;  %vm316_vm3 = vcmp.lt.s32.totalorder (!%p216_p2), %v787_v20, 16 }
   0xa   : > { %v663_v42 = vld [vmem:[%s870_s4 + $0x6] sm:$0x3] (!%p216_p2)  ;;  %vm338_vm4 = vcmp.lt.s32.totalorder (!%p216_p2), %v787_v20, 15  ;;  %vm360_vm5 = vcmp.lt.s32.totalorder (!%p216_p2), %v787_v20, 1  ;;  %vm397_vm6 = vcmp.lt.s32.totalorder (!%p216_p2), %v787_v20, 127  ;;  %vm419_vm7 = vcmp.lt.s32.totalorder (!%p216_p2), %v787_v20, 113 }
   0xb   : > { %278 = vperm.xlu0 (!%p216_p2), %694, %v275_v2   ;;  %v303_v27 = vrot.slane (!%p216_p2), %v298_v21, %v792_v22  ;;  %v325_v28 = vrot.slane (!%p216_p2), %v661_v23, %v792_v22  ;;  %v307_v29 = vrot.slane (!%p216_p2), %v298_v21, %v798_v25  ;;  %v329_v30 = vrot.slane (!%p216_p2), %v661_v23, %v798_v25 }
   0xc   : > { %v347_v46 = vrot.slane (!%p216_p2), %v662_v39, %v792_v22  ;;  %v351_v49 = vrot.slane (!%p216_p2), %v662_v39, %v798_v25  ;;  %v369_v50 = vrot.slane (!%p216_p2), %v663_v42, %v792_v22  ;;  %v373_v51 = vrot.slane (!%p216_p2), %v663_v42, %v798_v25 }
   0xd   : > { %s874_s22 = smov (!%p249_p3, %s651_s22), 1  ;;  %v388_v56 = vrot.slane %v664_v47, %v798_v25  ;;  %v384_v57 = vrot.slane %v664_v47, %v792_v22  ;;  %v406_v60 = vrot.slane %v665_v52, %v792_v22  ;;  %v410_v61 = vrot.slane %v665_v52, %v798_v25 }
   0xe   : > { %s761_s27 = sshll.u32 %s874_s22, 3  ;;  %vm441_vm8 = vcmp.lt.s32.totalorder %v787_v20, 112  ;;  %vm463_vm9 = vcmp.lt.s32.totalorder %v787_v20, 111  ;;  %vm492_vm11 = vcmask 588800   ;;  %vm556_vm12 = vcmask 7168  }
   0xf   : > { %s253_s30 = scalar_lea.vmem %s866_s0, %s761_s27  ;;  %s258_s15 = scalar_lea.vmem %s871_s5, %s761_s27  ;;  %vm563_vm13 = vcmask 15368  }
  0x10   : > { %v264_v3 = vld [vmem:[%s253_s30] sm:$0xff]  ;;  %s262_s18 = scalar_lea.vmem %s872_s6, %s761_s27 }
  0x11   : > { %v265_v4 = vunpack.c.l.bf16 %v264_v3  ;;  %v266_v5 = vunpack.c.h.bf16 %v264_v3 }
  0x86   : > { %v271_v6 = vpop.permute.xlu0 %270 }
  0x87   : > { %v273_v7 = vmul.f32 %v271_v6, %v265_v4  ;;  %v274_v8 = vmul.f32 %v271_v6, %v266_v5 }
  0x8a   : > { %v279_v9 = vpop.permute.xlu0 %278 }
  0x8b   : > { %v281_v10 = vadd.f32 %v279_v9, %v273_v7  ;;  %v282_v11 = vadd.f32 %v279_v9, %v274_v8 }
  0x8d   : > { %vm283_vm0 = vcmp.ge.f32.partialorder %v281_v10, 0.0  ;;  %v285_v12 = vmul.f32 0.2, %v281_v10  ;;  %v286_v13 = vmul.f32 0.2, %v282_v11  ;;  %vm284_vm1 = vcmp.ge.f32.partialorder %v282_v11, 0.0 }
  0x8f   : > { %v767_v14 = vsel %vm283_vm0, %v281_v10, %v285_v12  ;;  %v771_v15 = vsel %vm284_vm1, %v282_v11, %v286_v13  ;;  %v666_v10 = vld [vmem:[%s870_s4 + $0xc] sm:$0x3]  ;;  %v667_v13 = vld [vmem:[%s870_s4 + $0xe] sm:$0x3] }
  0x90   : > { %312 = vrot.lane.b32.xlu0 %v767_v14, %s704_s7  ;;  %289 = vrot.lane.b32.xlu1 %v767_v14, %s705_s8  ;;  %v392_v11 = vmul.f32 %v388_v56, %v771_v15  ;;  %v391_v12 = vmul.f32 %v384_v57, %v767_v14  ;;  %v432_v23 = vrot.slane %v666_v10, %v798_v25 }
  0x94   : > { %334 = vrot.lane.b32.xlu0 %v767_v14, %s706_s9  ;;  %291 = vrot.lane.b32.xlu1 %v771_v15, %s705_s8 }
  0x98   : > { %356 = vrot.lane.b32.xlu0 %v767_v14, %s707_s10  ;;  %314 = vrot.lane.b32.xlu1 %v771_v15, %s704_s7 }
  0x9c   : > { %393 = vrot.lane.b32.xlu0 %v767_v14, %s708_s11  ;;  %336 = vrot.lane.b32.xlu1 %v771_v15, %s706_s9 }
  0xa0   : > { %415 = vrot.lane.b32.xlu0 %v767_v14, %s709_s12  ;;  %358 = vrot.lane.b32.xlu1 %v771_v15, %s707_s10 }
  0xa4   : > { %437 = vrot.lane.b32.xlu0 %v767_v14, %s710_s13  ;;  %395 = vrot.lane.b32.xlu1 %v771_v15, %s708_s11 }
  0xa8   : > { %459 = vrot.lane.b32.xlu0 %v767_v14, %s711_s14  ;;  %417 = vrot.lane.b32.xlu1 %v771_v15, %s709_s12  ;;  %v450_v14 = vrot.slane %v667_v13, %v792_v22 }
  0xac   : > { %439 = vrot.lane.b32.xlu1 %v771_v15, %s710_s13 }
  0xb0   : > { %461 = vrot.lane.b32.xlu1 %v771_v15, %s711_s14  ;;  %v454_v15 = vrot.slane %v667_v13, %v798_v25 }
 0x102   : > { %v313_v18 = vpop.permute.xlu0 %312  ;;  %v290_v19 = vpop.permute.xlu1 %289 }
 0x106   : > { %v335_v24 = vpop.permute.xlu0 %334  ;;  %v292_v26 = vpop.permute.xlu1 %291 }
 0x107   : > { %v296_v31 = vsel %vm295_vm2, %v290_v19, %v292_v26  ;;  %v297_v32 = vsel %vm295_vm2, %v292_v26, %v290_v19  ;;  %v428_v19 = vrot.slane %v666_v10, %v792_v22 }
 0x108   : > { %v310_v37 = vmul.f32 %v303_v27, %v297_v32  ;;  %v311_v40 = vmul.f32 %v307_v29, %v296_v31 }
 0x10a   : > { %v357_v33 = vpop.permute.xlu0 %356  ;;  %v315_v34 = vpop.permute.xlu1 %314 }
 0x10b   : > { %v317_v35 = vsel %vm316_vm3, %v313_v18, %v315_v34  ;;  %v318_v36 = vsel %vm316_vm3, %v315_v34, %v313_v18 }
 0x10c   : > { %v332_v38 = vmul.f32 %v325_v28, %v318_v36  ;;  %v333_v41 = vmul.f32 %v329_v30, %v317_v35 }
 0x10e   : > { %v337_v43 = vpop.permute.xlu1 %336  ;;  %v482_v44 = vpack.c.bf16 %v333_v41, %v311_v40  ;;  %v481_v45 = vpack.c.bf16 %v332_v38, %v310_v37  ;;  %v394_v48 = vpop.permute.xlu0 %393 }
 0x10f   : > { %v339_v53 = vsel %vm338_vm4, %v335_v24, %v337_v43  ;;  %v340_v54 = vsel %vm338_vm4, %v337_v43, %v335_v24  ;;  %v668_v24 = vld [vmem:[%s870_s4 + $0x10] sm:$0x3] }
 0x110   : > { %503 = vmatprep.subr.bf16.mxu0 %v482_v44  ;;  %v354_v62 = vmul.f32 %v347_v46, %v340_v54  ;;  %v355_v63 = vmul.f32 %v351_v49, %v339_v53  ;;  %v472_v31 = vrot.slane %v668_v24, %v792_v22  ;;  %v476_v32 = vrot.slane %v668_v24, %v798_v25 }
 0x111   : > { %504 = vmatpush1.bf16.msra.mxu0 %v481_v45  ;;  %v491_v45 = vld [vmem:[%s869_s3] sm:$0xf] }
 0x112   : > { %v359_v55 = vpop.permute.xlu1 %358  ;;  %v416_v2 = vpop.permute.xlu0 %415 }
 0x113   : > { %v361_v58 = vsel %vm360_vm5, %v357_v33, %v359_v55  ;;  %v362_v59 = vsel %vm360_vm5, %v359_v55, %v357_v33 }
 0x114   : > { %v376_v0 = vmul.f32 %v369_v50, %v362_v59  ;;  %v377_v1 = vmul.f32 %v373_v51, %v361_v58 }
 0x116   : > { %v396_v3 = vpop.permute.xlu1 %395  ;;  %v484_v4 = vpack.c.bf16 %v377_v1, %v355_v63  ;;  %v483_v5 = vpack.c.bf16 %v376_v0, %v354_v62  ;;  %v438_v21 = vpop.permute.xlu0 %437 }
 0x117   : > { %v398_v6 = vsel %vm397_vm6, %v394_v48, %v396_v3  ;;  %v399_v7 = vsel %vm397_vm6, %v396_v3, %v394_v48 }
 0x118   : > { %v413_v8 = vmul.f32 %v406_v60, %v398_v6  ;;  %v414_v9 = vmul.f32 %v410_v61, %v399_v7  ;;  %505 = vmatprep.subr.bf16.mxu0 %v484_v4 }
 0x119   : > { %506 = vmatpush1.bf16.msra.mxu0 %v483_v5 }
 0x11a   : > { %v418_v16 = vpop.permute.xlu1 %417  ;;  %v486_v17 = vpack.c.bf16 %v414_v9, %v392_v11  ;;  %v485_v18 = vpack.c.bf16 %v413_v8, %v391_v12  ;;  %v460_v37 = vpop.permute.xlu0 %459 }
 0x11b   : > { %v420_v26 = vsel %vm419_vm7, %v416_v2, %v418_v16  ;;  %v421_v27 = vsel %vm419_vm7, %v418_v16, %v416_v2 }
 0x11c   : > { %507 = vmatprep.subr.bf16.mxu0 %v486_v17  ;;  %v435_v33 = vmul.f32 %v428_v19, %v420_v26  ;;  %v436_v34 = vmul.f32 %v432_v23, %v421_v27 }
 0x11d   : > { %508 = vmatpush1.bf16.msra.mxu0 %v485_v18 }
 0x11e   : > { %v440_v28 = vpop.permute.xlu1 %439 }
 0x11f   : > { %v442_v29 = vsel %vm441_vm8, %v438_v21, %v440_v28  ;;  %v443_v30 = vsel %vm441_vm8, %v440_v28, %v438_v21 }
 0x120   : > { %v457_v35 = vmul.f32 %v450_v14, %v442_v29  ;;  %v458_v36 = vmul.f32 %v454_v15, %v443_v30 }
 0x122   : > { %v462_v38 = vpop.permute.xlu1 %461  ;;  %v488_v39 = vpack.c.bf16 %v458_v36, %v436_v34  ;;  %v487_v40 = vpack.c.bf16 %v457_v35, %v435_v33 }
 0x123   : > { %v464_v41 = vsel %vm463_vm9, %v460_v37, %v462_v38  ;;  %v465_v42 = vsel %vm463_vm9, %v462_v38, %v460_v37 }
 0x124   : > { %v479_v43 = vmul.f32 %v472_v31, %v464_v41  ;;  %v480_v44 = vmul.f32 %v476_v32, %v465_v42  ;;  %509 = vmatprep.subr.bf16.mxu0 %v488_v39 }
 0x125   : > { %510 = vmatpush1.bf16.msra.mxu0 %v487_v40 }
 0x126   : > { %v489_v20 = vpack.c.bf16 %v479_v43, %v479_v43  ;;  %v490_v22 = vpack.c.bf16 %v480_v44, %v480_v44 }
 0x128   : > { %669 = vmatprep.subr.msk.bf16.mxu0 %vm496_vm10, %v490_v22  ;;  %v498_v25 = vsel %vm496_vm10, %v489_v20, 0 }
 0x129   : > { %512 = vmatpush1.bf16.msra.mxu0 %v498_v25 }
 0x12c   : > { %670 = vmatmul.mubr.msk.bf16.vlgmr.msra.gmra.mrb[0].mxu0 %vm492_vm11, %v491_v45 }
 0x1ff   : > { %v537_v46 = vpop.f32.mrb[0].mxu0 }
 0x200   : > { %v539_v47 = vpop.f32.mrb[1].mxu0  ;;  %v558_v48 = vmul.f32 %v537_v46, %v537_v46 }
 0x201   : > { %v676_v49 = vpack.c.bf16 %v539_v47, %v537_v46  ;;  %v541_v50 = vpop.f32.mrb[2].mxu0  ;;  %v553_v51 = vadd.f32 %v539_v47, %v537_v46  ;;  %v559_v52 = vmul.f32 %v539_v47, %v539_v47 }
 0x202   : > { %v542_v53 = vpop.f32.mrb[3].mxu0 }
 0x203   : > { %552 = vst [vmem:[%s258_s15] sm:$0xff] %v676_v49  ;;  %554 = vadd.xlane.f32.xlu0 %v553_v51  ;;  %v560_v54 = vadd.f32 %v559_v52, %v558_v48 }
 0x205   : > { %561 = vadd.xlane.f32.xlu1 %v560_v54 }
 0x290   : > { %v555_v55 = vpop.xlane.xlu0 %554 }
 0x291   : > { %557 = vst.msk [vmem:[%s262_s18] sm:$0xff] %vm556_vm12, %v555_v55 }
 0x292   : > { %v562_v56 = vpop.xlane.xlu1 %561 }
 0x293   : > { %564 = vst.msk [vmem:[%s262_s18] sm:$0xff] %vm563_vm13, %v562_v56 }
 0x294 PF: > { %s17_s21 = sadd.s32 1, %s701_s21  }
 0x295   : > { %p14_p4 = scmp.ge.s32.totalorder %s17_s21, 4  }
 0x297   :  { %16 = sbr.rel (!%p14_p4) target bundleno = 1 (0x1), region = 90 }

// kernel: freq_block_forward.3
= control target key start
LH: loop header
LB: loop body
LE: loop exit
PB: predicated region body
PF: predicated region fallthrough
CT: control target
= control target key end

     0   :  { %s1760_s24 = smov 0   ;;  %s2165_s0 = inlined_call_operand.vmem [shape: f32[2,8,256], index: 0, kind: input, shape index: {}]   ;;  %s2166_s1 = inlined_call_operand.vmem [shape: bf16[256,288], index: 1, kind: input, shape index: {}]   ;;  %s2167_s2 = inlined_call_operand.vmem [shape: bf16[288,256], index: 2, kind: input, shape index: {}]   ;;  %s2168_s3 = inlined_call_operand.vmem [shape: f32[8,288], index: 3, kind: input, shape index: {}]   ;;  %s2169_s4 = inlined_call_operand.vmem [shape: bf16[8,72], index: 4, kind: input, shape index: {}]   ;;  %s2170_s5 = inlined_call_operand.vmem [shape: f32[9,1,256], index: 5, kind: input, shape index: {}]   ;;  %s2171_s6 = inlined_call_operand.vmem [shape: bf16[2,8,256], index: 6, kind: output, shape index: {0}]   ;;  %s2172_s7 = inlined_call_operand.vmem [shape: f32[2,8,2], index: 7, kind: output, shape index: {1}]  }
   0x1 LB: > { %s1424_s25 = sadd.s32 4294967295, %s1707_s24   ;;  %p1428_p0 = scmp.ge.s32.totalorder %s1707_s24, 1  ;;  %s1707_s24 = sphi %s1760_s24, %s18_s24  }
   0x2   : > { %p240_p1 = scmp.lt.s32.totalorder %s1707_s24, 3 }
   0x4   : > { %p241_p2 = pnand %p1428_p0, %p240_p1 }
   0x5   : > { %v1583_v0 = vld [vmem:[%s2166_s1 + $0x4] ss:$12 sps:$4 sm:$0xff] (!%p241_p2)   ;;  %v1585_v1 = vld [vmem:[%s2166_s1 + $0xc8] ss:$12 sps:$4 sm:$0xff] (!%p241_p2)   ;;  %v1586_v2 = vld [vmem:[%s2166_s1] ss:$12 sps:$4 sm:$0xff] (!%p241_p2)  }
   0x6   : > { %244 = sbr.rel (%p241_p2) target bundleno = 1253 (0x4e5), region = 44  ;;  %615 = vmatprep.subr.bf16.mxu0 (!%p241_p2), %v1583_v0  ;;  %1535 = vmatprep.subr.bf16.mxu1 (!%p241_p2), %v1585_v1  ;;  %v1587_v3 = vld [vmem:[%s2166_s1 + $0x8] ss:$12 sps:$4 sm:$0xff] (!%p241_p2)   ;;  %v1590_v5 = vld [vmem:[%s2166_s1 + $0xe0] ss:$12 sps:$4 sm:$0xff] (!%p241_p2)   ;;  %p276_p3 = scmp.lt.s32.totalorder (!%p241_p2), %s1424_s25, 1 }
   0x7   : > { %616 = vmatpush1.bf16.msra.mxu0 (!%p241_p2), %v1586_v2  ;;  %v1588_v4 = vld [vmem:[%s2166_s1 + $0x1c] ss:$12 sps:$4 sm:$0xff] (!%p241_p2)   ;;  %1536 = vmatpush3.bf16.msra.mxu1 (!%p241_p2), %v1587_v3  ;;  %v1591_v6 = vld [vmem:[%s2166_s1 + $0x18] ss:$12 sps:$4 sm:$0xff] (!%p241_p2)   ;;  %v1592_v7 = vld [vmem:[%s2166_s1 + $0x20] ss:$12 sps:$4 sm:$0xff] (!%p241_p2)  }
   0x8   : > { %617 = vmatprep.subr.bf16.mxu0 (!%p241_p2), %v1588_v4  ;;  %1537 = vmatprep.subr.bf16.mxu1 (!%p241_p2), %v1590_v5  ;;  %v1593_v8 = vld [vmem:[%s2166_s1 + $0x34] ss:$12 sps:$4 sm:$0xff] (!%p241_p2)   ;;  %v1595_v9 = vld [vmem:[%s2166_s1 + $0xf8] ss:$12 sps:$4 sm:$0xff] (!%p241_p2)   ;;  %v1596_v10 = vld [vmem:[%s2166_s1 + $0x30] ss:$12 sps:$4 sm:$0xff] (!%p241_p2)  }
   0x9   : > { %v1597_v11 = vld [vmem:[%s2166_s1 + $0x38] ss:$12 sps:$4 sm:$0xff] (!%p241_p2)   ;;  %v1600_v13 = vld [vmem:[%s2166_s1 + $0x110] ss:$12 sps:$4 sm:$0xff] (!%p241_p2)   ;;  %v1601_v14 = vld [vmem:[%s2166_s1 + $0x48] ss:$12 sps:$4 sm:$0xff] (!%p241_p2)  }
   0xa   : > { %v1598_v12 = vld [vmem:[%s2166_s1 + $0x4c] ss:$12 sps:$4 sm:$0xff] (!%p241_p2)   ;;  %v1602_v15 = vld [vmem:[%s2166_s1 + $0x50] ss:$12 sps:$4 sm:$0xff] (!%p241_p2)   ;;  %v1605_v17 = vld [vmem:[%s2166_s1 + $0x128] ss:$12 sps:$4 sm:$0xff] (!%p241_p2)  }
   0xb   : > { %618 = vmatpush1.bf16.msra.mxu0 (!%p241_p2), %v1591_v6  ;;  %1538 = vmatpush3.bf16.msra.mxu1 (!%p241_p2), %v1592_v7  ;;  %v1603_v16 = vld [vmem:[%s2166_s1 + $0x64] ss:$12 sps:$4 sm:$0xff] (!%p241_p2)   ;;  %v1606_v18 = vld [vmem:[%s2166_s1 + $0x60] ss:$12 sps:$4 sm:$0xff] (!%p241_p2)   ;;  %v1607_v19 = vld [vmem:[%s2166_s1 + $0x68] ss:$12 sps:$4 sm:$0xff] (!%p241_p2)  }
   0xc   : > { %619 = vmatprep.subr.bf16.mxu0 (!%p241_p2), %v1593_v8  ;;  %1539 = vmatprep.subr.bf16.mxu1 (!%p241_p2), %v1595_v9  ;;  %v1608_v20 = vld [vmem:[%s2166_s1 + $0x7c] ss:$12 sps:$4 sm:$0xff] (!%p241_p2)   ;;  %v1610_v21 = vld [vmem:[%s2166_s1 + $0x140] ss:$12 sps:$4 sm:$0xff] (!%p241_p2)   ;;  %v1611_v22 = vld [vmem:[%s2166_s1 + $0x78] ss:$12 sps:$4 sm:$0xff] (!%p241_p2)  }
   0xd   : > { %s2174_s25 = smov (!%p276_p3, %s1424_s25), 1  ;;  %v1612_v23 = vld [vmem:[%s2166_s1 + $0x80] ss:$12 sps:$4 sm:$0xff]   ;;  %v1615_v25 = vld [vmem:[%s2166_s1 + $0x158] ss:$12 sps:$4 sm:$0xff]   ;;  %v698_v44 = vld [vmem:[%s2168_s3 + $0x10] sm:$0xff] }
   0xe   : > { %s1532_s9 = sshll.u32 %s2174_s25, 4  ;;  %v1613_v24 = vld [vmem:[%s2166_s1 + $0x94] ss:$12 sps:$4 sm:$0xff]   ;;  %v1616_v26 = vld [vmem:[%s2166_s1 + $0x90] ss:$12 sps:$4 sm:$0xff]   ;;  %v697_v43 = vld [vmem:[%s2168_s3 + $0x8] sm:$0xff] }
   0xf   : > { %620 = vmatpush1.bf16.msra.mxu0 %v1596_v10  ;;  %1540 = vmatpush3.bf16.msra.mxu1 %v1597_v11  ;;  %s280_s18 = scalar_lea.vmem %s2165_s0, %s1532_s9  ;;  %v1617_v27 = vld [vmem:[%s2166_s1 + $0x98] ss:$12 sps:$4 sm:$0xff]   ;;  %v1620_v29 = vld [vmem:[%s2166_s1 + $0x170] ss:$12 sps:$4 sm:$0xff]   ;;  %v1621_v31 = vld [vmem:[%s2166_s1 + $0xa8] ss:$12 sps:$4 sm:$0xff]  }
  0x10   : > { %621 = vmatprep.subr.bf16.mxu0 %v1598_v12  ;;  %1541 = vmatprep.subr.bf16.mxu1 %v1600_v13  ;;  %v1618_v28 = vld [vmem:[%s2166_s1 + $0xac] ss:$12 sps:$4 sm:$0xff]   ;;  %v1622_v32 = vld [vmem:[%s2166_s1 + $0xb0] ss:$12 sps:$4 sm:$0xff]   ;;  %v291_v34 = vld [vmem:[%s280_s18] sm:$0xff]  ;;  %s1709_s30 = smov 16  }
  0x11   : > { %v292_v30 = vld [vmem:[%s280_s18 + $0x8] sm:$0xff]  ;;  %v1623_v35 = vld [vmem:[%s2166_s1 + $0xc4] ss:$12 sps:$4 sm:$0xff]   ;;  %v293_v36 = vpack.c.bf16 %v291_v34, %v291_v34  ;;  %v1629_v40 = vld [vmem:[%s2166_s1 + $0xf4] ss:$12 sps:$4 sm:$0xff]   ;;  %s1710_s8 = smov 112  }
  0x12   : > { %v294_v33 = vpack.c.bf16 %v292_v30, %v292_v30  ;;  %v1625_v37 = vld [vmem:[%s2166_s1 + $0xc0] ss:$12 sps:$4 sm:$0xff]   ;;  %v1626_v38 = vld [vmem:[%s2166_s1 + $0xdc] ss:$12 sps:$4 sm:$0xff]   ;;  %v1628_v39 = vld [vmem:[%s2166_s1 + $0xd8] ss:$12 sps:$4 sm:$0xff]   ;;  %716 = vrot.lane.b32.xlu1 %v697_v43, %s1710_s8 }
  0x13   : > { %622 = vmatpush1.bf16.msra.mxu0 %v1601_v14  ;;  %1542 = vmatpush3.bf16.msra.mxu1 %v1602_v15  ;;  %v1631_v41 = vld [vmem:[%s2166_s1 + $0xf0] ss:$12 sps:$4 sm:$0xff]   ;;  %v1895_v42 = vld [vmem:[%s2168_s3] sm:$0xff]  ;;  %v1632_v45 = vld [vmem:[%s2166_s1 + $0x10c] ss:$12 sps:$4 sm:$0xff]   ;;  %vm730_vm0 = vcmask 130048  }
  0x14   : > { %623 = vmatprep.subr.bf16.mxu0 %v1603_v16  ;;  %1543 = vmatprep.subr.bf16.mxu1 %v1605_v17  ;;  %v1634_v46 = vld [vmem:[%s2166_s1 + $0x108] ss:$12 sps:$4 sm:$0xff]   ;;  %v1635_v47 = vld [vmem:[%s2166_s1 + $0x124] ss:$12 sps:$4 sm:$0xff]   ;;  %v1637_v48 = vld [vmem:[%s2166_s1 + $0x120] ss:$12 sps:$4 sm:$0xff]  }
  0x15   : > { %688 = vmatprep.mubr.bf16.mxu1 %v294_v33  ;;  %647 = vmatprep.mubr.bf16.mxu0 %v294_v33  ;;  %v1638_v49 = vld [vmem:[%s2166_s1 + $0x13c] ss:$12 sps:$4 sm:$0xff]   ;;  %v1640_v50 = vld [vmem:[%s2166_s1 + $0x138] ss:$12 sps:$4 sm:$0xff]   ;;  %v1641_v51 = vld [vmem:[%s2166_s1 + $0x154] ss:$12 sps:$4 sm:$0xff]  }
  0x16   : > { %726 = vrot.lane.b32.xlu0 %v1895_v42, %s1709_s30  ;;  %718 = vrot.lane.b32.xlu1 %v698_v44, %s1710_s8  ;;  %v1643_v52 = vld [vmem:[%s2166_s1 + $0x150] ss:$12 sps:$4 sm:$0xff]   ;;  %v1644_v53 = vld [vmem:[%s2166_s1 + $0x16c] ss:$12 sps:$4 sm:$0xff]   ;;  %vm708_vm1 = vcmask 916480   ;;  %vm976_vm2 = vcmask 261120  }
  0x17   : > { %624 = vmatpush1.bf16.msra.mxu0 %v1606_v18  ;;  %1544 = vmatpush3.bf16.msra.mxu1 %v1607_v19  ;;  %v1646_v54 = vld [vmem:[%s2166_s1 + $0x168] ss:$12 sps:$4 sm:$0xff]   ;;  %v1649_v1 = vld [vmem:[%s2167_s2 + $0x4] ss:$8 sps:$4 sm:$0xff]   ;;  %v1650_v5 = vld [vmem:[%s2167_s2 + $0x10] ss:$8 sps:$4 sm:$0xff]  }
  0x18   : > { %625 = vmatprep.subr.bf16.mxu0 %v1608_v20  ;;  %1545 = vmatprep.subr.bf16.mxu1 %v1610_v21  ;;  %v1647_v0 = vld [vmem:[%s2167_s2] ss:$8 sps:$4 sm:$0xff]   ;;  %v1652_v2 = vld [vmem:[%s2167_s2 + $0x14] ss:$8 sps:$4 sm:$0xff]   ;;  %v1655_v9 = vld [vmem:[%s2167_s2 + $0x24] ss:$8 sps:$4 sm:$0xff]  }
  0x19   : > { %v1653_v11 = vld [vmem:[%s2167_s2 + $0x20] ss:$8 sps:$4 sm:$0xff]   ;;  %v1658_v13 = vld [vmem:[%s2167_s2 + $0x34] ss:$8 sps:$4 sm:$0xff]   ;;  %v1656_v14 = vld [vmem:[%s2167_s2 + $0x30] ss:$8 sps:$4 sm:$0xff]  }
  0x1a   : > { %728 = vrot.lane.b32.xlu0 %v697_v43, %s1709_s30  ;;  %v1689_v15 = vld [vmem:[%s2167_s2 + $0x100] ss:$8 sps:$4 sm:$0xff]   ;;  %v1691_v16 = vld [vmem:[%s2167_s2 + $0x104] ss:$8 sps:$4 sm:$0xff]   ;;  %v1664_v19 = vld [vmem:[%s2167_s2 + $0x54] ss:$8 sps:$4 sm:$0xff]  }
  0x1b   : > { %626 = vmatpush1.bf16.msra.mxu0 %v1611_v22  ;;  %1546 = vmatpush3.bf16.msra.mxu1 %v1612_v23  ;;  %v1661_v17 = vld [vmem:[%s2167_s2 + $0x44] ss:$8 sps:$4 sm:$0xff]   ;;  %v1659_v18 = vld [vmem:[%s2167_s2 + $0x40] ss:$8 sps:$4 sm:$0xff]   ;;  %v1662_v20 = vld [vmem:[%s2167_s2 + $0x50] ss:$8 sps:$4 sm:$0xff]  }
  0x1c   : > { %627 = vmatprep.subr.bf16.mxu0 %v1613_v24  ;;  %1547 = vmatprep.subr.bf16.mxu1 %v1615_v25  ;;  %v1667_v21 = vld [vmem:[%s2167_s2 + $0x64] ss:$8 sps:$4 sm:$0xff]   ;;  %v1665_v22 = vld [vmem:[%s2167_s2 + $0x60] ss:$8 sps:$4 sm:$0xff]   ;;  %v1670_v23 = vld [vmem:[%s2167_s2 + $0x74] ss:$8 sps:$4 sm:$0xff]  }
  0x1d   : > { %v1668_v24 = vld [vmem:[%s2167_s2 + $0x70] ss:$8 sps:$4 sm:$0xff]   ;;  %v1673_v25 = vld [vmem:[%s2167_s2 + $0x84] ss:$8 sps:$4 sm:$0xff]   ;;  %v1677_v30 = vld [vmem:[%s2167_s2 + $0xa0] ss:$8 sps:$4 sm:$0xff]  }
  0x1e   : > { %v1685_v33 = vld [vmem:[%s2167_s2 + $0xc4] ss:$8 sps:$4 sm:$0xff]   ;;  %v1683_v34 = vld [vmem:[%s2167_s2 + $0xc0] ss:$8 sps:$4 sm:$0xff]   ;;  %s1713_s20 = smov 32   ;;  %s1714_s21 = smov 30  }
  0x1f   : > { %628 = vmatpush1.bf16.msra.mxu0 %v1616_v26  ;;  %1548 = vmatpush3.bf16.msra.mxu1 %v1617_v27  ;;  %v1671_v26 = vld [vmem:[%s2167_s2 + $0x80] ss:$8 sps:$4 sm:$0xff]   ;;  %v1676_v27 = vld [vmem:[%s2167_s2 + $0x94] ss:$8 sps:$4 sm:$0xff]   ;;  %s1715_s22 = smov 2   ;;  %s1716_s23 = smov 126  }
  0x20   : > { %629 = vmatprep.subr.bf16.mxu0 %v1618_v28  ;;  %1549 = vmatprep.subr.bf16.mxu1 %v1620_v29  ;;  %v1674_v28 = vld [vmem:[%s2167_s2 + $0x90] ss:$8 sps:$4 sm:$0xff]   ;;  %v1679_v29 = vld [vmem:[%s2167_s2 + $0xa4] ss:$8 sps:$4 sm:$0xff]   ;;  %s1717_s26 = smov 98   ;;  %s1718_s27 = smov 96  }
  0x21   : > { %s1719_s28 = smov 94   ;;  %vm1269_vm11 = vcmask 1043456   ;;  %vm1265_vm12 = vcmask 588800   ;;  %vm1329_vm13 = vcmask 7168   ;;  %vm1336_vm14 = vcmask 15368  }
  0x23   : > { %630 = vmatpush1.bf16.msra.mxu0 %v1621_v31  ;;  %1550 = vmatpush3.bf16.msra.mxu1 %v1622_v32  ;;  %v1682_v31 = vld [vmem:[%s2167_s2 + $0xb4] ss:$8 sps:$4 sm:$0xff]   ;;  %v1680_v32 = vld [vmem:[%s2167_s2 + $0xb0] ss:$8 sps:$4 sm:$0xff]  }
  0x24   : > { %631 = vmatprep.subr.bf16.mxu0 %v1623_v35  ;;  %980 = vmatprep.subr.bf16.mxu1 %v1649_v1  ;;  %v1688_v35 = vld [vmem:[%s2167_s2 + $0xd4] ss:$8 sps:$4 sm:$0xff]  }
  0x26   : > { %689 = vmatmul.mubr.bf16.vlgmr.msra.gmra.mrb[0].mxu1 %v293_v36 }
  0x27   : > { %632 = vmatpush1.bf16.msra.mxu0 %v1625_v37  ;;  %981 = vmatpush1.bf16.msra.mxu1 %v1647_v0  ;;  %v1694_v37 = vld [vmem:[%s2167_s2 + $0xe4] ss:$8 sps:$4 sm:$0xff]  }
  0x28   : > { %633 = vmatprep.subr.bf16.mxu0 %v1626_v38  ;;  %982 = vmatprep.subr.bf16.mxu1 %v1652_v2  ;;  %v1692_v38 = vld [vmem:[%s2167_s2 + $0xe0] ss:$8 sps:$4 sm:$0xff]  }
  0x2b   : > { %634 = vmatpush1.bf16.msra.mxu0 %v1628_v39  ;;  %983 = vmatpush1.bf16.msra.mxu1 %v1650_v5 }
  0x2c   : > { %635 = vmatprep.subr.bf16.mxu0 %v1629_v40  ;;  %984 = vmatprep.subr.bf16.mxu1 %v1655_v9  ;;  %v1697_v40 = vld [vmem:[%s2167_s2 + $0x114] ss:$8 sps:$4 sm:$0xff]  }
  0x2f   : > { %636 = vmatpush1.bf16.msra.mxu0 %v1631_v41  ;;  %985 = vmatpush1.bf16.msra.mxu1 %v1653_v11 }
  0x30   : > { %637 = vmatprep.subr.bf16.mxu0 %v1632_v45  ;;  %986 = vmatprep.subr.bf16.mxu1 %v1658_v13  ;;  %v1698_v45 = vld [vmem:[%s2167_s2 + $0xf0] ss:$8 sps:$4 sm:$0xff]  }
  0x33   : > { %638 = vmatpush1.bf16.msra.mxu0 %v1634_v46  ;;  %987 = vmatpush1.bf16.msra.mxu1 %v1656_v14 }
  0x34   : > { %639 = vmatprep.subr.bf16.mxu0 %v1635_v47  ;;  %988 = vmatprep.subr.bf16.mxu1 %v1661_v17  ;;  %v1711_v47 = vmov 0  }
  0x37   : > { %640 = vmatpush1.bf16.msra.mxu0 %v1637_v48  ;;  %989 = vmatpush1.bf16.msra.mxu1 %v1659_v18  ;;  %v1071_v18 = vld [vmem:[%s2170_s5] sm:$0x3] }
  0x38   : > { %641 = vmatprep.subr.bf16.mxu0 %v1638_v49  ;;  %990 = vmatprep.subr.bf16.mxu1 %v1664_v19 }
  0x3b   : > { %642 = vmatpush1.bf16.msra.mxu0 %v1640_v50  ;;  %991 = vmatpush1.bf16.msra.mxu1 %v1662_v20 }
  0x3c   : > { %643 = vmatprep.subr.bf16.mxu0 %v1641_v51  ;;  %992 = vmatprep.subr.bf16.mxu1 %v1667_v21  ;;  %v1519_v21 = vld [vmem:[%s2170_s5 + $0x2] sm:$0x3] }
  0x3f   : > { %644 = vmatpush1.bf16.msra.mxu0 %v1643_v52  ;;  %993 = vmatpush1.bf16.msra.mxu1 %v1665_v22 }
  0x40   : > { %645 = vmatprep.subr.bf16.mxu0 %v1644_v53  ;;  %994 = vmatprep.subr.bf16.mxu1 %v1670_v23 }
  0x43   : > { %646 = vmatpush1.bf16.msra.mxu0 %v1646_v54  ;;  %995 = vmatpush1.bf16.msra.mxu1 %v1668_v24 }
  0x44   : > { %1021 = vmatprep.subr.bf16.mxu0 %v1691_v16  ;;  %996 = vmatprep.subr.bf16.mxu1 %v1673_v25 }
  0x46   : > { %648 = vmatmul.mubr.bf16.vlgmr.msra.gmra.mrb[0].mxu0 %v293_v36  ;;  %v1686_v36 = vld [vmem:[%s2167_s2 + $0xd0] ss:$8 sps:$4 sm:$0xff]  }
  0x47   : > { %1022 = vmatpush1.bf16.msra.mxu0 %v1689_v15  ;;  %997 = vmatpush1.bf16.msra.mxu1 %v1671_v26  ;;  %v1066_v15 = vlaneseq }
  0x48   : > { %998 = vmatprep.subr.bf16.mxu1 %v1676_v27  ;;  %1023 = vmatprep.subr.bf16.mxu0 %v1697_v40  ;;  %v1521_v40 = vld [vmem:[%s2170_s5 + $0x6] sm:$0x3] }
  0x49   : > { %1053 = vmatprep.mubr.bf16.mxu0 %v1711_v47  ;;  %v1074_v16 = vshrl.u32 %v1066_v15, 7  ;;  %v2091_v17 = vand.u32 127, %v1066_v15 }
  0x4b   : > { %999 = vmatpush1.bf16.msra.mxu1 %v1674_v28  ;;  %v2096_v20 = vsub.s32 0, %v1074_v16  ;;  %vm1068_vm3 = vcmp.lt.s32.totalorder %v2091_v17, 34  ;;  %v2102_v22 = vsub.s32 1, %v1074_v16  ;;  %vm1089_vm4 = vcmp.lt.s32.totalorder %v2091_v17, 32 }
  0x4c   : > { %1000 = vmatprep.subr.bf16.mxu1 %v1679_v29  ;;  %vm1111_vm5 = vcmp.lt.s32.totalorder %v2091_v17, 30  ;;  %vm1133_vm6 = vcmp.lt.s32.totalorder %v2091_v17, 2  ;;  %vm1170_vm7 = vcmp.lt.s32.totalorder %v2091_v17, 126  ;;  %vm1192_vm8 = vcmp.lt.s32.totalorder %v2091_v17, 98 }
  0x4d   : > { %v1076_v24 = vrot.slane %v1071_v18, %v2096_v20  ;;  %v1080_v25 = vrot.slane %v1071_v18, %v2102_v22  ;;  %v1098_v26 = vrot.slane %v1519_v21, %v2096_v20  ;;  %v1102_v27 = vrot.slane %v1519_v21, %v2102_v22 }
  0x4e   : > { %vm1214_vm9 = vcmp.lt.s32.totalorder %v2091_v17, 96  ;;  %vm1236_vm10 = vcmp.lt.s32.totalorder %v2091_v17, 94 }
  0x4f   : > { %1001 = vmatpush1.bf16.msra.mxu1 %v1677_v30 }
  0x50   : > { %1002 = vmatprep.subr.bf16.mxu1 %v1682_v31 }
  0x53   : > { %1003 = vmatpush1.bf16.msra.mxu1 %v1680_v32 }
  0x54   : > { %1004 = vmatprep.subr.bf16.mxu1 %v1685_v33 }
  0x57   : > { %1005 = vmatpush1.bf16.msra.mxu1 %v1683_v34 }
  0x58   : > { %1006 = vmatprep.subr.bf16.mxu1 %v1688_v35 }
  0x5b   : > { %1007 = vmatpush1.bf16.msra.mxu1 %v1686_v36 }
  0x5c   : > { %1008 = vmatprep.subr.bf16.mxu1 %v1694_v37 }
  0x5f   : > { %1009 = vmatpush1.bf16.msra.mxu1 %v1692_v38  ;;  %v1520_v38 = vld [vmem:[%s2170_s5 + $0x4] sm:$0x3] }
  0x84   : > { %v717_v39 = vpop.permute.xlu1 %716 }
  0x88   : > { %v727_v55 = vpop.permute.xlu0 %726  ;;  %v719_v41 = vpop.permute.xlu1 %718 }
  0x89   : > { %v720_v46 = vsel %vm708_vm1, %v717_v39, %v719_v41 }
  0x8c   : > { %v729_v56 = vpop.permute.xlu0 %728 }
  0x8d   : > { %v731_v59 = vsel %vm730_vm0, %v727_v55, %v729_v56 }
  0xf9   : > { %v1551_v57 = vpop.f32.mrb[0].mxu1 }
  0xfa   : > { %v1552_v58 = vpop.f32.mrb[1].mxu1 }
  0xfb   : > { %v1553_v60 = vadd.f32 %v1552_v58, %v1551_v57  ;;  %v1554_v61 = vpop.f32.mrb[2].mxu1 }
  0xfc   : > { %v1555_v62 = vpop.f32.mrb[3].mxu1 }
  0xfd   : > { %v735_v63 = vmul.f32 %v1553_v60, %v731_v59  ;;  %v701_v12 = vmul.f32 %v1553_v60, %v698_v44  ;;  %v1700_v44 = vld [vmem:[%s2167_s2 + $0xf4] ss:$8 sps:$4 sm:$0xff]  }
  0xfe   : > { %1010 = vmatprep.subr.bf16.mxu1 %v1700_v44 }
  0xff   : > { %740 = vrot.lane.b32.xlu1 %v735_v63, %s1710_s8  ;;  %1011 = vmatpush1.bf16.msra.mxu1 %v1698_v45  ;;  %v1120_v45 = vrot.slane %v1520_v38, %v2096_v20 }
 0x119   : > { %v1949_v3 = vpop.f32.mrb[0].mxu0 }
 0x11a   : > { %v1951_v4 = vpop.f32.mrb[1].mxu0  ;;  %v723_v49 = vmul.f32 %v720_v46, %v1949_v3  ;;  %v699_v59 = vmul.f32 %v1895_v42, %v1949_v3  ;;  %v1522_v46 = vld [vmem:[%s2170_s5 + $0x8] sm:$0x3] }
 0x11b   : > { %v1957_v6 = vmul.f32 %v697_v43, %v1951_v4  ;;  %v734_v7 = vmul.f32 %v727_v55, %v1951_v4  ;;  %v653_v8 = vpop.f32.mrb[2].mxu0  ;;  %v1695_v43 = vld [vmem:[%s2167_s2 + $0x110] ss:$8 sps:$4 sm:$0xff]   ;;  %v724_v50 = vmul.f32 %v719_v41, %v1951_v4 }
 0x11c   : > { %v654_v10 = vpop.f32.mrb[3].mxu0  ;;  %1024 = vmatpush1.bf16.msra.mxu0 %v1695_v43 }
 0x11d   : > { %738 = vrot.lane.b32.xlu0 %v734_v7, %s1710_s8  ;;  %704 = vrot.lane.b32.xlu1 %v1957_v6, %s1710_s8 }
 0x121   : > { %706 = vrot.lane.b32.xlu0 %v701_v12, %s1710_s8 }
 0x171   : > { %v741_v48 = vpop.permute.xlu1 %740 }
 0x172   : > { %v746_v53 = vadd.f32 %v741_v48, %v724_v50  ;;  %v1523_v50 = vld [vmem:[%s2170_s5 + $0xa] sm:$0x3] }
 0x18f   : > { %v739_v51 = vpop.permute.xlu0 %738  ;;  %v705_v57 = vpop.permute.xlu1 %704 }
 0x190   : > { %v742_v52 = vsel %vm708_vm1, %v739_v51, %v741_v48  ;;  %v1142_v48 = vrot.slane %v1521_v40, %v2096_v20 }
 0x191   : > { %v745_v54 = vadd.f32 %v742_v52, %v723_v49  ;;  %v1146_v49 = vrot.slane %v1521_v40, %v2102_v22 }
 0x193   : > { %v1578_v55 = vpack.i.bf16 %v746_v53, %v745_v54  ;;  %v707_v56 = vpop.permute.xlu0 %706 }
 0x194   : > { %v709_v58 = vsel %vm708_vm1, %v705_v57, %v707_v56  ;;  %v713_v62 = vsub.f32 %v1957_v6, %v707_v56  ;;  %v1161_v56 = vrot.slane %v1522_v46, %v2102_v22 }
 0x195   : > { %1579 = vrot.lane.b32.xlu0 %v1578_v55, %s1709_s30  ;;  %v712_v61 = vsub.f32 %v699_v59, %v709_v58  ;;  %s1712_s30 = smov 34   ;;  %v1157_v55 = vrot.slane %v1522_v46, %v2096_v20  ;;  %v1179_v59 = vrot.slane %v1523_v50, %v2096_v20 }
 0x197   : > { %v757_v7 = vpack.c.bf16 %v712_v61, %v712_v61 }
 0x207   : > { %v1580_v60 = vpop.permute.xlu0 %1579 }
 0x208   : > { %v1582_v63 = vunpack.i.h.bf16 %v1580_v60  ;;  %v1581_v0 = vunpack.i.l.bf16 %v1580_v60  ;;  %v1183_v60 = vrot.slane %v1523_v50, %v2102_v22 }
 0x20a   : > { %v753_v1 = vsel %vm730_vm0, %v1581_v0, %v1582_v63  ;;  %v756_v2 = vsel %vm730_vm0, %v713_v62, %v1581_v0 }
 0x20b   : > { %v759_v4 = vpack.c.bf16 %v753_v1, %v753_v1  ;;  %v758_v5 = vpack.c.bf16 %v756_v2, %v756_v2 }
 0x20d   : > { %1012 = vmatprep.mubr.bf16.mxu1 %v758_v5  ;;  %1518 = vmatmul.mubr.msk.bf16.vlgmr.msra.gmra.mrb[4].mxu0 %vm976_vm2, %v759_v4 }
 0x20e   : > { %1013 = vmatmul.mubr.bf16.vlgmr.msra.gmra.mrb[4].mxu1 %v757_v7  ;;  %1308 = vmatprep.mubr.bf16.mxu0 %v1711_v47  ;;  %v1124_v47 = vrot.slane %v1520_v38, %v2102_v22 }
 0x2e0   : > { %v1055_v8 = vpop.f32.mrb[4].mxu0 }
 0x2e1   : > { %v1014_v42 = vpop.f32.mrb[4].mxu1  ;;  %v1057_v3 = vpop.f32.mrb[5].mxu0 }
 0x2e2   : > { %v2071_v9 = vadd.f32 %v1055_v8, %v1014_v42  ;;  %v1016_v6 = vpop.f32.mrb[5].mxu1  ;;  %v1059_v10 = vpop.f32.mrb[6].mxu0 }
 0x2e3   : > { %v2073_v11 = vadd.f32 %v1057_v3, %v1016_v6  ;;  %v1018_v12 = vpop.f32.mrb[6].mxu1  ;;  %v1060_v13 = vpop.f32.mrb[7].mxu0  ;;  %v1524_v10 = vld [vmem:[%s2170_s5 + $0xc] sm:$0x3] }
 0x2e4   : > { %v1019_v14 = vpop.f32.mrb[7].mxu1  ;;  %1062 = vrot.lane.b32.xlu1 %v2071_v9, %s1712_s30  ;;  %v1164_v42 = vmul.f32 %v1157_v55, %v2071_v9  ;;  %v1201_v18 = vrot.slane %v1524_v10, %v2096_v20 }
 0x2e5   : > { %1064 = vrot.lane.b32.xlu0 %v2073_v11, %s1712_s30  ;;  %v1165_v12 = vmul.f32 %v1161_v56, %v2073_v11  ;;  %v1525_v14 = vld [vmem:[%s2170_s5 + $0xe] sm:$0x3] }
 0x2e6   : > { %v1227_v21 = vrot.slane %v1525_v14, %v2102_v22 }
 0x2e8   : > { %1085 = vrot.lane.b32.xlu1 %v2071_v9, %s1713_s20 }
 0x2e9   : > { %1087 = vrot.lane.b32.xlu0 %v2073_v11, %s1713_s20 }
 0x2ec   : > { %1107 = vrot.lane.b32.xlu1 %v2071_v9, %s1714_s21 }
 0x2ed   : > { %1109 = vrot.lane.b32.xlu0 %v2073_v11, %s1714_s21 }
 0x2f0   : > { %1129 = vrot.lane.b32.xlu1 %v2071_v9, %s1715_s22 }
 0x2f1   : > { %1131 = vrot.lane.b32.xlu0 %v2073_v11, %s1715_s22 }
 0x2f4   : > { %1166 = vrot.lane.b32.xlu1 %v2071_v9, %s1716_s23 }
 0x2f5   : > { %1168 = vrot.lane.b32.xlu0 %v2073_v11, %s1716_s23 }
 0x2f8   : > { %1188 = vrot.lane.b32.xlu1 %v2071_v9, %s1717_s26 }
 0x2f9   : > { %1190 = vrot.lane.b32.xlu0 %v2073_v11, %s1717_s26 }
 0x2fc   : > { %1210 = vrot.lane.b32.xlu1 %v2071_v9, %s1718_s27 }
 0x2fd   : > { %1212 = vrot.lane.b32.xlu0 %v2073_v11, %s1718_s27 }
 0x300   : > { %1232 = vrot.lane.b32.xlu1 %v2071_v9, %s1719_s28 }
 0x301   : > { %1234 = vrot.lane.b32.xlu0 %v2073_v11, %s1719_s28  ;;  %v1223_v11 = vrot.slane %v1525_v14, %v2096_v20  ;;  %s1533_s28 = sshll.u32 %s2174_s25, 3 }
 0x302   : > { %s285_s10 = scalar_lea.vmem %s2171_s6, %s1533_s28  ;;  %s289_s25 = scalar_lea.vmem %s2172_s7, %s1533_s28 }
 0x356   : > { %v1063_v19 = vpop.permute.xlu1 %1062 }
 0x357   : > { %v1065_v23 = vpop.permute.xlu0 %1064 }
 0x358   : > { %v1069_v28 = vsel %vm1068_vm3, %v1063_v19, %v1065_v23  ;;  %v1070_v29 = vsel %vm1068_vm3, %v1065_v23, %v1063_v19  ;;  %v1205_v19 = vrot.slane %v1524_v10, %v2102_v22  ;;  %v1526_v23 = vld [vmem:[%s2170_s5 + $0x10] sm:$0x3] }
 0x359   : > { %v1083_v34 = vmul.f32 %v1076_v24, %v1070_v29  ;;  %v1084_v35 = vmul.f32 %v1080_v25, %v1069_v28 }
 0x35a   : > { %v1086_v30 = vpop.permute.xlu1 %1085 }
 0x35b   : > { %v1088_v31 = vpop.permute.xlu0 %1087 }
 0x35c   : > { %v1090_v32 = vsel %vm1089_vm4, %v1086_v30, %v1088_v31  ;;  %v1091_v33 = vsel %vm1089_vm4, %v1088_v31, %v1086_v30  ;;  %v1245_v30 = vrot.slane %v1526_v23, %v2096_v20  ;;  %v1249_v31 = vrot.slane %v1526_v23, %v2102_v22 }
 0x35d   : > { %v1105_v36 = vmul.f32 %v1098_v26, %v1091_v33  ;;  %v1106_v37 = vmul.f32 %v1102_v27, %v1090_v32 }
 0x35e   : > { %v1108_v39 = vpop.permute.xlu1 %1107 }
 0x35f   : > { %v1254_v41 = vpack.c.bf16 %v1105_v36, %v1083_v34  ;;  %v1110_v43 = vpop.permute.xlu0 %1109  ;;  %v1255_v44 = vpack.c.bf16 %v1106_v37, %v1084_v35 }
 0x360   : > { %v1112_v51 = vsel %vm1111_vm5, %v1108_v39, %v1110_v43  ;;  %v1113_v52 = vsel %vm1111_vm5, %v1110_v43, %v1108_v39 }
 0x361   : > { %1276 = vmatprep.subr.bf16.mxu0 %v1255_v44  ;;  %v1127_v61 = vmul.f32 %v1120_v45, %v1113_v52  ;;  %v1128_v62 = vmul.f32 %v1124_v47, %v1112_v51  ;;  %v1264_v45 = vld [vmem:[%s2169_s4] sm:$0xf] }
 0x362   : > { %1277 = vmatpush1.bf16.msra.mxu0 %v1254_v41  ;;  %v1130_v53 = vpop.permute.xlu1 %1129 }
 0x363   : > { %v1132_v54 = vpop.permute.xlu0 %1131 }
 0x364   : > { %v1134_v57 = vsel %vm1133_vm6, %v1130_v53, %v1132_v54  ;;  %v1135_v58 = vsel %vm1133_vm6, %v1132_v54, %v1130_v53 }
 0x365   : > { %v1149_v63 = vmul.f32 %v1142_v48, %v1135_v58  ;;  %v1150_v0 = vmul.f32 %v1146_v49, %v1134_v57 }
 0x366   : > { %v1167_v1 = vpop.permute.xlu1 %1166 }
 0x367   : > { %v1256_v2 = vpack.c.bf16 %v1149_v63, %v1127_v61  ;;  %v1169_v4 = vpop.permute.xlu0 %1168  ;;  %v1257_v5 = vpack.c.bf16 %v1150_v0, %v1128_v62 }
 0x368   : > { %v1171_v7 = vsel %vm1170_vm7, %v1167_v1, %v1169_v4  ;;  %v1172_v8 = vsel %vm1170_vm7, %v1169_v4, %v1167_v1 }
 0x369   : > { %v1186_v3 = vmul.f32 %v1179_v59, %v1171_v7  ;;  %v1187_v6 = vmul.f32 %v1183_v60, %v1172_v8  ;;  %1278 = vmatprep.subr.bf16.mxu0 %v1257_v5 }
 0x36a   : > { %1279 = vmatpush1.bf16.msra.mxu0 %v1256_v2  ;;  %v1189_v13 = vpop.permute.xlu1 %1188 }
 0x36b   : > { %v1258_v15 = vpack.c.bf16 %v1186_v3, %v1164_v42  ;;  %v1191_v16 = vpop.permute.xlu0 %1190  ;;  %v1259_v9 = vpack.c.bf16 %v1187_v6, %v1165_v12 }
 0x36c   : > { %v1193_v24 = vsel %vm1192_vm8, %v1189_v13, %v1191_v16  ;;  %v1194_v25 = vsel %vm1192_vm8, %v1191_v16, %v1189_v13 }
 0x36d   : > { %1280 = vmatprep.subr.bf16.mxu0 %v1259_v9  ;;  %v1208_v32 = vmul.f32 %v1201_v18, %v1193_v24  ;;  %v1209_v33 = vmul.f32 %v1205_v19, %v1194_v25 }
 0x36e   : > { %v1211_v26 = vpop.permute.xlu1 %1210  ;;  %1281 = vmatpush1.bf16.msra.mxu0 %v1258_v15 }
 0x36f   : > { %v1213_v27 = vpop.permute.xlu0 %1212 }
 0x370   : > { %v1215_v28 = vsel %vm1214_vm9, %v1211_v26, %v1213_v27  ;;  %v1216_v29 = vsel %vm1214_vm9, %v1213_v27, %v1211_v26 }
 0x371   : > { %v1230_v34 = vmul.f32 %v1223_v11, %v1215_v28  ;;  %v1231_v35 = vmul.f32 %v1227_v21, %v1216_v29 }
 0x372   : > { %v1233_v36 = vpop.permute.xlu1 %1232 }
 0x373   : > { %v1260_v37 = vpack.c.bf16 %v1230_v34, %v1208_v32  ;;  %v1235_v38 = vpop.permute.xlu0 %1234  ;;  %v1261_v39 = vpack.c.bf16 %v1231_v35, %v1209_v33 }
 0x374   : > { %v1237_v40 = vsel %vm1236_vm10, %v1233_v36, %v1235_v38  ;;  %v1238_v41 = vsel %vm1236_vm10, %v1235_v38, %v1233_v36 }
 0x375   : > { %v1252_v43 = vmul.f32 %v1245_v30, %v1237_v40  ;;  %v1253_v44 = vmul.f32 %v1249_v31, %v1238_v41  ;;  %1282 = vmatprep.subr.bf16.mxu0 %v1261_v39 }
 0x376   : > { %1283 = vmatpush1.bf16.msra.mxu0 %v1260_v37 }
 0x377   : > { %v1262_v17 = vpack.c.bf16 %v1252_v43, %v1252_v43  ;;  %v1263_v20 = vpack.c.bf16 %v1253_v44, %v1253_v44 }
 0x379   : > { %1527 = vmatprep.subr.msk.bf16.mxu0 %vm1269_vm11, %v1263_v20  ;;  %v1271_v22 = vsel %vm1269_vm11, %v1262_v17, 0 }
 0x37a   : > { %1285 = vmatpush1.bf16.msra.mxu0 %v1271_v22 }
 0x37d   : > { %1528 = vmatmul.mubr.msk.bf16.vlgmr.msra.gmra.mrb[8].mxu0 %vm1265_vm12, %v1264_v45 }
 0x450   : > { %v1310_v46 = vpop.f32.mrb[8].mxu0 }
 0x451   : > { %v1312_v47 = vpop.f32.mrb[9].mxu0  ;;  %v1331_v48 = vmul.f32 %v1310_v46, %v1310_v46 }
 0x452   : > { %v1534_v49 = vpack.c.bf16 %v1312_v47, %v1310_v46  ;;  %v1314_v50 = vpop.f32.mrb[10].mxu0  ;;  %v1326_v51 = vadd.f32 %v1312_v47, %v1310_v46  ;;  %v1332_v52 = vmul.f32 %v1312_v47, %v1312_v47 }
 0x453   : > { %v1315_v53 = vpop.f32.mrb[11].mxu0 }
 0x454   : > { %1327 = vadd.xlane.f32.xlu1 %v1326_v51  ;;  %v1333_v54 = vadd.f32 %v1332_v52, %v1331_v48  ;;  %1325 = vst [vmem:[%s285_s10] sm:$0xff] %v1534_v49 }
 0x456   : > { %1334 = vadd.xlane.f32.xlu0 %v1333_v54 }
 0x4e1   : > { %v1328_v55 = vpop.xlane.xlu1 %1327 }
 0x4e2   : > { %1330 = vst.msk [vmem:[%s289_s25] sm:$0xff] %vm1329_vm13, %v1328_v55 }
 0x4e3   : > { %v1335_v56 = vpop.xlane.xlu0 %1334 }
 0x4e4   : > { %1337 = vst.msk [vmem:[%s289_s25] sm:$0xff] %vm1336_vm14, %v1335_v56 }
 0x4e5 PF: > { %s18_s24 = sadd.s32 1, %s1707_s24  }
 0x4e6   : > { %p15_p4 = scmp.ge.s32.totalorder %s18_s24, 4  }
 0x4e8   :  { %17 = sbr.rel (!%p15_p4) target bundleno = 1 (0x1), region = 94 }

</bundles_post_ra>
